<compile_context>
chip_gen: v5e
topology: v5e:2x2
jax: 0.10.0
libtpu: 0.0.40
codegen_flags: <defaults>
</compile_context>

<pallas_src>
import functools
import math

import jax
import jax.numpy as jnp
from jax import lax
from jax.experimental import pallas as pl
from jax.experimental.pallas import tpu as pltpu

LN_EPS = 1e-5
TILE_V = 512          # vocab tile for the tied lm_head
_PAD = 8              # sublane pad in front of the conv scratch (holds halo)


def _round_up(x, m):
    return ((x + m - 1) // m) * m


def _layer_norm(x, w, b):
    # x: (rows, D) f32, w/b: (1, D) f32
    mean = jnp.mean(x, axis=-1, keepdims=True)
    xc = x - mean
    var = jnp.mean(xc * xc, axis=-1, keepdims=True)
    return xc * lax.rsqrt(var + LN_EPS) * w + b


def _silu(x):
    return x * jax.nn.sigmoid(x)


# ---------------------------------------------------------------------------
# Fused backbone kernel: grid = (batch, layer); layer body chunked along L.
# ---------------------------------------------------------------------------
def fused_backbone_kernel(hid_in_ref,
                          norm_w_ref, norm_b_ref,
                          w_inx_ref, w_inz_ref,
                          conv_w_ref, conv_b_ref,
                          w_proj_ref, w_dt_ref, dt_b_ref,
                          a_neg_ref, d_par_ref, w_out_ref,
                          nf_w_ref, nf_b_ref,
                          xnorm_out_ref,
                          hid_sc, res_sc, xpad_sc, h_sc,
                          *, d_inner, d_state, d_conv, dt_rank,
                          chunk, n_chunks):
    layer = pl.program_id(1)
    last = pl.num_programs(1) - 1
    kc = d_conv - 1

    # ---- layer 0: load embedding block, zero the residual stream ----------
    @pl.when(layer == 0)
    def _():
        hid_sc[...] = hid_in_ref[0]
        res_sc[...] = jnp.zeros_like(res_sc)

    # ---- per-layer prologue: reset scan state and conv halo ----------------
    h_sc[...] = jnp.zeros_like(h_sc)
    xpad_sc[pl.ds(0, _PAD), :] = jnp.zeros((_PAD, d_inner), jnp.float32)

    # small per-layer parameters read once, reused by every chunk
    norm_w = norm_w_ref[0]
    norm_b = norm_b_ref[0]
    conv_b = conv_b_ref[0]
    dt_b = dt_b_ref[0]
    a_neg = a_neg_ref[0]                      # (d_state, d_inner) = -exp(A_log)^T
    d_par = d_par_ref[0]
    cw = conv_w_ref[0]                        # (d_conv, d_inner)
    cw_taps = [cw[k:k + 1, :] for k in range(d_conv)]   # hoisted out of loop
    nf_w = nf_w_ref[...]
    nf_b = nf_b_ref[...]

    @pl.loop(0, n_chunks)
    def _(c):
        base = pl.multiple_of(c * chunk, chunk)

        # ---- prenorm residual add + LayerNorm (bf16 carry, f32 math) -------
        hid_c = hid_sc[pl.ds(base, chunk), :].astype(jnp.float32)
        res_c = res_sc[pl.ds(base, chunk), :].astype(jnp.float32)
        residual = hid_c + res_c
        res_sc[pl.ds(base, chunk), :] = residual.astype(jnp.bfloat16)
        xln = _layer_norm(residual, norm_w, norm_b).astype(jnp.bfloat16)

        # ---- in_proj: x / z halves as two lane-dense bf16 matmuls ----------
        x = jnp.dot(xln, w_inx_ref[0], preferred_element_type=jnp.float32)
        z = jnp.dot(xln, w_inz_ref[0], preferred_element_type=jnp.float32)

        # ---- causal depthwise conv with a (d_conv-1)-row cross-chunk halo --
        xpad_sc[pl.ds(_PAD, chunk), :] = x
        acc = xpad_sc[pl.ds(_PAD - kc, chunk), :] * cw_taps[0]
        for k in range(1, d_conv):
            acc = acc + xpad_sc[pl.ds(_PAD - kc + k, chunk), :] * cw_taps[k]
        xact = _silu(acc + conv_b)                              # (chunk, d_inner)
        xpad_sc[pl.ds(_PAD - kc, kc), :] = x[chunk - kc:, :]    # halo for next chunk

        # ---- fused x_proj: [B | C | dt_low | pad] lane-dense output --------
        xact_bf = xact.astype(jnp.bfloat16)
        proj = jnp.dot(xact_bf, w_proj_ref[0],
                       preferred_element_type=jnp.float32)      # (chunk, n_proj)
        b_mat = proj[:, :d_state]                               # (chunk, d_state)
        c_mat = proj[:, d_state:2 * d_state]                    # (chunk, d_state)
        dt_low = proj[:, 2 * d_state:2 * d_state + dt_rank]     # (chunk, dt_rank)
        delta = jax.nn.softplus(
            jnp.dot(dt_low.astype(jnp.bfloat16), w_dt_ref[0],
                    preferred_element_type=jnp.float32) + dt_b)  # (chunk, d_inner)

        # ---- selective scan: hoist exp / broadcasts out of the serial loop -
        da3 = jnp.exp(delta[:, None, :] * a_neg[None, :, :])    # (chunk, S, di)
        dbu3 = (delta * xact)[:, None, :] * b_mat[:, :, None]   # (chunk, S, di)
        cb3 = jnp.broadcast_to(c_mat[:, :, None],
                               (chunk, d_state, d_inner))       # (chunk, S, di)

        h = h_sc[...]                                           # (S, d_inner)
        ys = []
        for t in range(chunk):          # serial: only fma + sublane reduce
            h = da3[t] * h + dbu3[t]
            ys.append(jnp.sum(h * cb3[t], axis=0, keepdims=True))
        h_sc[...] = h
        y = jnp.concatenate(ys, axis=0)                         # (chunk, d_inner)

        # ---- skip term, gate, out_proj --------------------------------------
        y = y + xact * d_par
        y = y * _silu(z)
        out = jnp.dot(y.astype(jnp.bfloat16), w_out_ref[0],
                      preferred_element_type=jnp.float32)       # (chunk, D)
        hid_sc[pl.ds(base, chunk), :] = out.astype(jnp.bfloat16)

        # ---- last layer: final add + norm_f, emit bf16 rows -----------------
        @pl.when(layer == last)
        def _():
            final = _layer_norm(out + residual, nf_w, nf_b)
            xnorm_out_ref[:, pl.ds(base, chunk), :] = (
                final.astype(jnp.bfloat16)[None])


_STACKED_NAMES = ('norm_w', 'norm_b', 'w_inx', 'w_inz', 'conv_w', 'conv_b',
                  'w_proj', 'w_dt', 'dt_b', 'a_neg', 'd_par', 'w_out')


def _stacked_spec(per_layer_shape):
    nd = len(per_layer_shape)
    return pl.BlockSpec((1,) + tuple(per_layer_shape),
                        lambda b, l, _nd=nd: (l,) + (0,) * _nd)


def _vmem_budget(stacked, L_pad, D, d_inner, d_state, chunk, n_layer):
    per_layer_w = sum(int(a.size) // n_layer * a.dtype.itemsize
                      for a in stacked)
    io_blocks = 2 * 2 * L_pad * D * 2                    # in+out bf16, 2x-buffered
    scratch = (2 * L_pad * D * 2 + (chunk + _PAD) * d_inner * 4
               + d_state * d_inner * 4)
    transients = (3 * chunk * d_state * d_inner + 12 * chunk * d_inner) * 4
    est = 2 * per_layer_w + io_blocks + scratch + transients
    return int(max(32 << 20, min(112 << 20, est * 3 // 2 + (4 << 20))))


def mamba_backbone(hidden_emb, params, *, d_inner, d_state, d_conv, dt_rank,
                   chunk):
    B, L_pad, D = hidden_emb.shape
    n_layer = params['w_inx'].shape[0]
    n_chunks = L_pad // chunk
    stacked = [params[k] for k in _STACKED_NAMES]

    kern = functools.partial(fused_backbone_kernel, d_inner=d_inner,
                             d_state=d_state, d_conv=d_conv, dt_rank=dt_rank,
                             chunk=chunk, n_chunks=n_chunks)

    in_specs = ([pl.BlockSpec((1, L_pad, D), lambda b, l: (b, 0, 0))]
                + [_stacked_spec(w.shape[1:]) for w in stacked]
                + [pl.BlockSpec((1, D), lambda b, l: (0, 0)),
                   pl.BlockSpec((1, D), lambda b, l: (0, 0))])

    scratch = [pltpu.VMEM((L_pad, D), jnp.bfloat16),            # hidden (carried)
               pltpu.VMEM((L_pad, D), jnp.bfloat16),            # residual (carried)
               pltpu.VMEM((chunk + _PAD, d_inner), jnp.float32),  # conv window+halo
               pltpu.VMEM((d_state, d_inner), jnp.float32)]     # scan state

    vmem_limit = _vmem_budget(stacked, L_pad, D, d_inner, d_state, chunk,
                              n_layer)

    # TODO(synk): optional v6e-only variant folding batch into the matmul M
    # dim (stream each layer's weights once per step) is not implemented.
    return pl.pallas_call(
        kern,
        grid=(B, n_layer),
        in_specs=in_specs,
        out_specs=pl.BlockSpec((1, L_pad, D), lambda b, l: (b, 0, 0)),
        out_shape=jax.ShapeDtypeStruct((B, L_pad, D), jnp.bfloat16),
        scratch_shapes=scratch,
        compiler_params=pltpu.CompilerParams(
            dimension_semantics=("parallel", "arbitrary"),
            vmem_limit_bytes=vmem_limit),
    )(hidden_emb, *stacked, params['norm_f_w'], params['norm_f_b'])


# ---------------------------------------------------------------------------
# Tied lm_head: row tiles x vocab tiles, bf16 MXU, f32 logits.
# ---------------------------------------------------------------------------
def lm_head_kernel(x_ref, emb_ref, out_ref):
    out_ref[...] = lax.dot_general(x_ref[...], emb_ref[...],
                                   (((1,), (1,)), ((), ())),
                                   preferred_element_type=jnp.float32)


def lm_head(x_rows, emb_head):
    rows, D = x_rows.shape
    v_pad = emb_head.shape[0]
    tile_r = min(256, _round_up(rows, 8))
    rows_pad = _round_up(rows, tile_r)
    if rows_pad != rows:
        x_rows = jnp.pad(x_rows, ((0, rows_pad - rows), (0, 0)))
    grid = (rows_pad // tile_r, v_pad // TILE_V)
    logits = pl.pallas_call(
        lm_head_kernel,
        grid=grid,
        in_specs=[pl.BlockSpec((tile_r, D), lambda r, v: (r, 0)),
                  pl.BlockSpec((TILE_V, D), lambda r, v: (v, 0))],
        out_specs=pl.BlockSpec((tile_r, TILE_V), lambda r, v: (r, v)),
        out_shape=jax.ShapeDtypeStruct((rows_pad, v_pad), jnp.float32),
        compiler_params=pltpu.CompilerParams(
            dimension_semantics=("parallel", "parallel")),
    )(x_rows, emb_head)
    return logits[:rows]


# ---------------------------------------------------------------------------
# Parameter construction (matches MambaConfig-default module structure).
# ---------------------------------------------------------------------------
def init_params(key, *, n_layer, d_model, vocab, d_state, d_conv, expand=2):
    d_inner = expand * d_model
    dt_rank = math.ceil(d_model / 16)
    n_proj = _round_up(2 * d_state + dt_rank, 128)

    keys = jax.random.split(key, 1 + n_layer)
    emb = jax.random.normal(keys[0], (vocab, d_model), jnp.float32) * 0.02

    per = {k: [] for k in _STACKED_NAMES}
    for i in range(n_layer):
        ks = jax.random.split(keys[1 + i], 5)
        w_in = jax.random.normal(ks[0], (2 * d_inner, d_model),
                                 jnp.float32) * (d_model ** -0.5)
        conv_w = jax.random.normal(ks[1], (d_conv, d_inner),
                                   jnp.float32) * (d_conv ** -0.5)
        w_x = jax.random.normal(ks[2], (dt_rank + 2 * d_state, d_inner),
                                jnp.float32) * (d_inner ** -0.5)
        w_dt = jax.random.normal(ks[3], (d_inner, dt_rank),
                                 jnp.float32) * (dt_rank ** -0.5)
        w_out = (jax.random.normal(ks[4], (d_model, d_inner), jnp.float32)
                 * (d_inner ** -0.5) / math.sqrt(n_layer))

        # fused x_proj columns: [B | C | dt_low | zero pad] (lane-dense width)
        w_proj = jnp.zeros((d_inner, n_proj), jnp.float32)
        w_proj = w_proj.at[:, :d_state].set(w_x[dt_rank:dt_rank + d_state].T)
        w_proj = w_proj.at[:, d_state:2 * d_state].set(
            w_x[dt_rank + d_state:].T)
        w_proj = w_proj.at[:, 2 * d_state:2 * d_state + dt_rank].set(
            w_x[:dt_rank].T)

        per['norm_w'].append(jnp.ones((1, d_model), jnp.float32))
        per['norm_b'].append(jnp.zeros((1, d_model), jnp.float32))
        per['w_inx'].append(w_in[:d_inner].T)            # (d_model, d_inner)
        per['w_inz'].append(w_in[d_inner:].T)            # (d_model, d_inner)
        per['conv_w'].append(conv_w)                     # (d_conv, d_inner)
        per['conv_b'].append(jnp.zeros((1, d_inner), jnp.float32))
        per['w_proj'].append(w_proj)                     # (d_inner, n_proj)
        per['w_dt'].append(w_dt.T)                       # (dt_rank, d_inner)
        per['dt_b'].append(jnp.log(jnp.expm1(
            jnp.linspace(1e-3, 1e-1, d_inner,
                         dtype=jnp.float32))).reshape(1, d_inner))
        per['a_neg'].append(jnp.tile(
            -jnp.arange(1, d_state + 1, dtype=jnp.float32)[:, None],
            (1, d_inner)))                               # = -exp(A_log)^T
        per['d_par'].append(jnp.ones((1, d_inner), jnp.float32))
        per['w_out'].append(w_out.T)                     # (d_inner, d_model)

    bf16_keys = ('w_inx', 'w_inz', 'w_proj', 'w_dt', 'w_out')
    params = {}
    for k, v in per.items():
        arr = jnp.stack(v, axis=0)
        params[k] = arr.astype(jnp.bfloat16) if k in bf16_keys else arr

    v_pad = _round_up(vocab, TILE_V)
    emb_head = jnp.zeros((v_pad, d_model), jnp.bfloat16)
    emb_head = emb_head.at[:vocab].set(emb.astype(jnp.bfloat16))

    params['embedding'] = emb                    # f32, for the lookup
    params['emb_head'] = emb_head                # bf16, vocab-padded, tied head
    params['norm_f_w'] = jnp.ones((1, d_model), jnp.float32)
    params['norm_f_b'] = jnp.zeros((1, d_model), jnp.float32)
    dims = dict(d_inner=d_inner, d_state=d_state, d_conv=d_conv,
                dt_rank=dt_rank)
    return params, dims


def mamba_lm_head_forward(input_ids, params, *, d_inner, d_state, d_conv,
                          dt_rank, num_last_tokens=0):
    emb = params['embedding']                    # (V, D) f32
    B, L = input_ids.shape
    V, D = emb.shape

    # fixed 8-aligned L-chunk (<=32); trailing zero-pad rows are harmless
    # because the conv and the scan are strictly causal.
    chunk = min(32, _round_up(max(L, 8), 8))
    L_pad = _round_up(L, chunk)

    # embedding lookup is gather glue; everything heavy runs in Pallas
    hidden = jnp.take(emb, input_ids, axis=0).astype(jnp.bfloat16)
    if L_pad != L:
        hidden = jnp.pad(hidden, ((0, 0), (0, L_pad - L), (0, 0)))

    xnorm = mamba_backbone(hidden, params, d_inner=d_inner, d_state=d_state,
                           d_conv=d_conv, dt_rank=dt_rank, chunk=chunk)
    logits_p = lm_head(xnorm.reshape(B * L_pad, D), params['emb_head'])
    logits = logits_p.reshape(B, L_pad, -1)[:, :L, :V]
    if num_last_tokens > 0:
        logits = logits[:, -num_last_tokens:]
    return logits


if __name__ == "__main__":
    # small MambaConfig-consistent sizes
    d_model = 32
    n_layer = 2
    vocab_size = 48          # multiple of pad_vocab_size_multiple=8
    expand = 2
    d_state = 16
    d_conv = 4
    B, L = 2, 8

    key = jax.random.PRNGKey(0)
    k_params, k_tokens = jax.random.split(key)
    params, dims = init_params(k_params, n_layer=n_layer, d_model=d_model,
                               vocab=vocab_size, d_state=d_state,
                               d_conv=d_conv, expand=expand)

    input_ids = jax.random.randint(k_tokens, (B, L), 0, vocab_size,
                                   dtype=jnp.int32)

    logits = mamba_lm_head_forward(input_ids, params, **dims)
    jax.block_until_ready(logits)

    assert logits.shape == (B, L, vocab_size), logits.shape
    assert logits.dtype == jnp.float32
    assert bool(jnp.all(jnp.isfinite(logits)))
    # TODO(synk): inference_params / allocate_inference_cache (incremental
    # decoding state) are not implemented; only the full-sequence forward.
    print("KERNEL_OK")
</pallas_src>

<mosaic_0001>
module attributes {stable_mosaic.version = 11 : i64} {
  func.func @fused_backbone_kernel(%arg0: i32, %arg1: i32, %arg2: memref<1x8x32xbf16, #tpu.memory_space<vmem>>, %arg3: memref<1x1x32xf32, #tpu.memory_space<vmem>>, %arg4: memref<1x1x32xf32, #tpu.memory_space<vmem>>, %arg5: memref<1x32x64xbf16, #tpu.memory_space<vmem>>, %arg6: memref<1x32x64xbf16, #tpu.memory_space<vmem>>, %arg7: memref<1x4x64xf32, #tpu.memory_space<vmem>>, %arg8: memref<1x1x64xf32, #tpu.memory_space<vmem>>, %arg9: memref<1x64x128xbf16, #tpu.memory_space<vmem>>, %arg10: memref<1x2x64xbf16, #tpu.memory_space<vmem>>, %arg11: memref<1x1x64xf32, #tpu.memory_space<vmem>>, %arg12: memref<1x16x64xf32, #tpu.memory_space<vmem>>, %arg13: memref<1x1x64xf32, #tpu.memory_space<vmem>>, %arg14: memref<1x64x32xbf16, #tpu.memory_space<vmem>>, %arg15: memref<1x32xf32, #tpu.memory_space<vmem>>, %arg16: memref<1x32xf32, #tpu.memory_space<vmem>>, %arg17: memref<1x8x32xbf16, #tpu.memory_space<vmem>>, %arg18: memref<8x32xbf16, #tpu.memory_space<vmem>>, %arg19: memref<8x32xbf16, #tpu.memory_space<vmem>>, %arg20: memref<16x64xf32, #tpu.memory_space<vmem>>, %arg21: memref<16x64xf32, #tpu.memory_space<vmem>>) attributes {dimension_semantics = [#tpu.dimension_semantics<parallel>, #tpu.dimension_semantics<arbitrary>], iteration_bounds = array<i64: 2, 2>, scalar_prefetch = 0 : i64, scratch_operands = 4 : i64, tpu.core_type = #tpu.core_type<tc>, window_params = [{transform_indices = @transform_0, window_bounds = array<i64: 1, 8, 32>}, {transform_indices = @transform_1, window_bounds = array<i64: 1, 1, 32>}, {transform_indices = @transform_2, window_bounds = array<i64: 1, 1, 32>}, {transform_indices = @transform_3, window_bounds = array<i64: 1, 32, 64>}, {transform_indices = @transform_4, window_bounds = array<i64: 1, 32, 64>}, {transform_indices = @transform_5, window_bounds = array<i64: 1, 4, 64>}, {transform_indices = @transform_6, window_bounds = array<i64: 1, 1, 64>}, {transform_indices = @transform_7, window_bounds = array<i64: 1, 64, 128>}, {transform_indices = @transform_8, window_bounds = array<i64: 1, 2, 64>}, {transform_indices = @transform_9, window_bounds = array<i64: 1, 1, 64>}, {transform_indices = @transform_10, window_bounds = array<i64: 1, 16, 64>}, {transform_indices = @transform_11, window_bounds = array<i64: 1, 1, 64>}, {transform_indices = @transform_12, window_bounds = array<i64: 1, 64, 32>}, {pipeline_mode = #tpu.pipeline_mode<synchronous>, transform_indices = @transform_13, window_bounds = array<i64: 1, 32>}, {pipeline_mode = #tpu.pipeline_mode<synchronous>, transform_indices = @transform_14, window_bounds = array<i64: 1, 32>}, {transform_indices = @transform_15, window_bounds = array<i64: 1, 8, 32>}]} {
    %c0_i32 = arith.constant 0 : i32
    %0 = arith.cmpi eq, %arg1, %c0_i32 : i32
    %1 = arith.extui %0 : i1 to i32
    %c0_i32_0 = arith.constant 0 : i32
    %2 = arith.cmpi ne, %1, %c0_i32_0 : i32
    scf.if %2 {
      %c0_88 = arith.constant 0 : index
      %c0_89 = arith.constant 0 : index
      %c0_90 = arith.constant 0 : index
      %247 = vector.load %arg2[%c0_88, %c0_89, %c0_90] : memref<1x8x32xbf16, #tpu.memory_space<vmem>>, vector<1x8x32xbf16>
      %248 = vector.shape_cast %247 : vector<1x8x32xbf16> to vector<8x32xbf16>
      %c0_91 = arith.constant 0 : index
      %c0_92 = arith.constant 0 : index
      %249 = vector.load %arg18[%c0_91, %c0_92] : memref<8x32xbf16, #tpu.memory_space<vmem>>, vector<8x32xbf16>
      tpu.vector_store %arg18[%c0_91, %c0_92], %248 {strides = array<i32>} : memref<8x32xbf16, #tpu.memory_space<vmem>>, vector<8x32xbf16>,
      %cst_93 = arith.constant 0.000000e+00 : bf16
      %250 = vector.broadcast %cst_93 : bf16 to vector<8x32xbf16>
      %c0_94 = arith.constant 0 : index
      %c0_95 = arith.constant 0 : index
      %251 = vector.load %arg19[%c0_94, %c0_95] : memref<8x32xbf16, #tpu.memory_space<vmem>>, vector<8x32xbf16>
      tpu.vector_store %arg19[%c0_94, %c0_95], %250 {strides = array<i32>} : memref<8x32xbf16, #tpu.memory_space<vmem>>, vector<8x32xbf16>,
    } else {
    }
    %cst = arith.constant 0.000000e+00 : f32
    %3 = vector.broadcast %cst : f32 to vector<16x64xf32>
    %c0 = arith.constant 0 : index
    %c0_1 = arith.constant 0 : index
    %4 = vector.load %arg21[%c0, %c0_1] : memref<16x64xf32, #tpu.memory_space<vmem>>, vector<16x64xf32>
    tpu.vector_store %arg21[%c0, %c0_1], %3 {strides = array<i32>} : memref<16x64xf32, #tpu.memory_space<vmem>>, vector<16x64xf32>,
    %cst_2 = arith.constant 0.000000e+00 : f32
    %5 = vector.broadcast %cst_2 : f32 to vector<8x64xf32>
    %c0_3 = arith.constant 0 : index
    %c0_4 = arith.constant 0 : index
    %6 = vector.load %arg20[%c0_3, %c0_4] : memref<16x64xf32, #tpu.memory_space<vmem>>, vector<8x64xf32>
    tpu.vector_store %arg20[%c0_3, %c0_4], %5 {strides = array<i32>} : memref<16x64xf32, #tpu.memory_space<vmem>>, vector<8x64xf32>,
    %c0_5 = arith.constant 0 : index
    %c0_6 = arith.constant 0 : index
    %c0_7 = arith.constant 0 : index
    %7 = vector.load %arg3[%c0_5, %c0_6, %c0_7] : memref<1x1x32xf32, #tpu.memory_space<vmem>>, vector<1x1x32xf32>
    %8 = vector.shape_cast %7 : vector<1x1x32xf32> to vector<1x32xf32>
    %c0_8 = arith.constant 0 : index
    %c0_9 = arith.constant 0 : index
    %c0_10 = arith.constant 0 : index
    %9 = vector.load %arg4[%c0_8, %c0_9, %c0_10] : memref<1x1x32xf32, #tpu.memory_space<vmem>>, vector<1x1x32xf32>
    %10 = vector.shape_cast %9 : vector<1x1x32xf32> to vector<1x32xf32>
    %c0_11 = arith.constant 0 : index
    %c0_12 = arith.constant 0 : index
    %c0_13 = arith.constant 0 : index
    %11 = vector.load %arg8[%c0_11, %c0_12, %c0_13] : memref<1x1x64xf32, #tpu.memory_space<vmem>>, vector<1x1x64xf32>
    %12 = vector.shape_cast %11 : vector<1x1x64xf32> to vector<1x64xf32>
    %c0_14 = arith.constant 0 : index
    %c0_15 = arith.constant 0 : index
    %c0_16 = arith.constant 0 : index
    %13 = vector.load %arg11[%c0_14, %c0_15, %c0_16] : memref<1x1x64xf32, #tpu.memory_space<vmem>>, vector<1x1x64xf32>
    %14 = vector.shape_cast %13 : vector<1x1x64xf32> to vector<1x64xf32>
    %c0_17 = arith.constant 0 : index
    %c0_18 = arith.constant 0 : index
    %c0_19 = arith.constant 0 : index
    %15 = vector.load %arg12[%c0_17, %c0_18, %c0_19] : memref<1x16x64xf32, #tpu.memory_space<vmem>>, vector<1x16x64xf32>
    %16 = vector.shape_cast %15 : vector<1x16x64xf32> to vector<16x64xf32>
    %c0_20 = arith.constant 0 : index
    %c0_21 = arith.constant 0 : index
    %c0_22 = arith.constant 0 : index
    %17 = vector.load %arg13[%c0_20, %c0_21, %c0_22] : memref<1x1x64xf32, #tpu.memory_space<vmem>>, vector<1x1x64xf32>
    %18 = vector.shape_cast %17 : vector<1x1x64xf32> to vector<1x64xf32>
    %c0_23 = arith.constant 0 : index
    %c0_24 = arith.constant 0 : index
    %c0_25 = arith.constant 0 : index
    %19 = vector.load %arg7[%c0_23, %c0_24, %c0_25] : memref<1x4x64xf32, #tpu.memory_space<vmem>>, vector<1x4x64xf32>
    %20 = vector.shape_cast %19 : vector<1x4x64xf32> to vector<4x64xf32>
    %21 = vector.extract_strided_slice %20 {offsets = [0, 0], sizes = [1, 64], strides = [1, 1]} : vector<4x64xf32> to vector<1x64xf32>
    %22 = vector.extract_strided_slice %20 {offsets = [1, 0], sizes = [1, 64], strides = [1, 1]} : vector<4x64xf32> to vector<1x64xf32>
    %23 = vector.extract_strided_slice %20 {offsets = [2, 0], sizes = [1, 64], strides = [1, 1]} : vector<4x64xf32> to vector<1x64xf32>
    %24 = vector.extract_strided_slice %20 {offsets = [3, 0], sizes = [1, 64], strides = [1, 1]} : vector<4x64xf32> to vector<1x64xf32>
    %c0_26 = arith.constant 0 : index
    %c0_27 = arith.constant 0 : index
    %25 = vector.load %arg15[%c0_26, %c0_27] : memref<1x32xf32, #tpu.memory_space<vmem>>, vector<1x32xf32>
    %c0_28 = arith.constant 0 : index
    %c0_29 = arith.constant 0 : index
    %26 = vector.load %arg16[%c0_28, %c0_29] : memref<1x32xf32, #tpu.memory_space<vmem>>, vector<1x32xf32>
    %c0_i32_30 = arith.constant 0 : i32
    %c1_i32 = arith.constant 1 : i32
    %27 = arith.muli %c0_i32_30, %c1_i32 : i32
    %c0_i32_31 = arith.constant 0 : i32
    %28 = arith.addi %c0_i32_31, %27 : i32
    %c8_i32 = arith.constant 8 : i32
    %29 = arith.muli %28, %c8_i32 : i32
    %30 = tpu.assume_multiple %29, 8 : i32
    %31 = arith.index_cast %30 : i32 to index
    %c0_32 = arith.constant 0 : index
    %32 = vector.load %arg18[%31, %c0_32] : memref<8x32xbf16, #tpu.memory_space<vmem>>, vector<8x32xbf16>
    %33 = arith.extf %32 : vector<8x32xbf16> to vector<8x32xf32>
    %34 = arith.index_cast %30 : i32 to index
    %c0_33 = arith.constant 0 : index
    %35 = vector.load %arg19[%34, %c0_33] : memref<8x32xbf16, #tpu.memory_space<vmem>>, vector<8x32xbf16>
    %36 = arith.extf %35 : vector<8x32xbf16> to vector<8x32xf32>
    %37 = arith.addf %33, %36 : vector<8x32xf32>
    %38 = arith.truncf %37 : vector<8x32xf32> to vector<8x32xbf16>
    %39 = arith.index_cast %30 : i32 to index
    %c0_34 = arith.constant 0 : index
    %40 = vector.load %arg19[%39, %c0_34] : memref<8x32xbf16, #tpu.memory_space<vmem>>, vector<8x32xbf16>
    tpu.vector_store %arg19[%39, %c0_34], %38 {strides = array<i32>} : memref<8x32xbf16, #tpu.memory_space<vmem>>, vector<8x32xbf16>,
    %cst_35 = arith.constant dense<0.000000e+00> : vector<8xf32>
    %41 = vector.multi_reduction <add>, %37, %cst_35 [1] : vector<8x32xf32> to vector<8xf32>
    %42 = vector.shape_cast %41 : vector<8xf32> to vector<8x1xf32>
    %cst_36 = arith.constant 3.200000e+01 : f32
    %43 = vector.broadcast %cst_36 : f32 to vector<8x1xf32>
    %44 = arith.divf %42, %43 : vector<8x1xf32>
    %45 = vector.broadcast %44 : vector<8x1xf32> to vector<8x32xf32>
    %46 = arith.subf %37, %45 : vector<8x32xf32>
    %47 = arith.mulf %46, %46 : vector<8x32xf32>
    %cst_37 = arith.constant dense<0.000000e+00> : vector<8xf32>
    %48 = vector.multi_reduction <add>, %47, %cst_37 [1] : vector<8x32xf32> to vector<8xf32>
    %49 = vector.shape_cast %48 : vector<8xf32> to vector<8x1xf32>
    %cst_38 = arith.constant 3.200000e+01 : f32
    %50 = vector.broadcast %cst_38 : f32 to vector<8x1xf32>
    %51 = arith.divf %49, %50 : vector<8x1xf32>
    %cst_39 = arith.constant 9.99999974E-6 : f32
    %52 = vector.broadcast %cst_39 : f32 to vector<8x1xf32>
    %53 = arith.addf %51, %52 : vector<8x1xf32>
    %54 = math.rsqrt %53 : vector<8x1xf32>
    %55 = vector.broadcast %54 : vector<8x1xf32> to vector<8x32xf32>
    %56 = arith.mulf %46, %55 : vector<8x32xf32>
    %57 = vector.broadcast %8 : vector<1x32xf32> to vector<8x32xf32>
    %58 = arith.mulf %56, %57 : vector<8x32xf32>
    %59 = vector.broadcast %10 : vector<1x32xf32> to vector<8x32xf32>
    %60 = arith.addf %58, %59 : vector<8x32xf32>
    %61 = arith.truncf %60 : vector<8x32xf32> to vector<8x32xbf16>
    %c0_40 = arith.constant 0 : index
    %c0_41 = arith.constant 0 : index
    %c0_42 = arith.constant 0 : index
    %62 = vector.load %arg5[%c0_40, %c0_41, %c0_42] : memref<1x32x64xbf16, #tpu.memory_space<vmem>>, vector<1x32x64xbf16>
    %63 = vector.shape_cast %62 : vector<1x32x64xbf16> to vector<32x64xbf16>
    %cst_43 = arith.constant dense<0.000000e+00> : vector<8x64xf32>
    %64 = tpu.matmul %61, %63, %cst_43 {dimension_numbers = #tpu.dot_dimension_numbers<[1], [0], [0], [1], [0, 0, 1, 1], [], []>} : vector<8x32xbf16>, vector<32x64xbf16>, vector<8x64xf32> -> vector<8x64xf32>
    %c0_44 = arith.constant 0 : index
    %c0_45 = arith.constant 0 : index
    %c0_46 = arith.constant 0 : index
    %65 = vector.load %arg6[%c0_44, %c0_45, %c0_46] : memref<1x32x64xbf16, #tpu.memory_space<vmem>>, vector<1x32x64xbf16>
    %66 = vector.shape_cast %65 : vector<1x32x64xbf16> to vector<32x64xbf16>
    %cst_47 = arith.constant dense<0.000000e+00> : vector<8x64xf32>
    %67 = tpu.matmul %61, %66, %cst_47 {dimension_numbers = #tpu.dot_dimension_numbers<[1], [0], [0], [1], [0, 0, 1, 1], [], []>} : vector<8x32xbf16>, vector<32x64xbf16>, vector<8x64xf32> -> vector<8x64xf32>
    %c8 = arith.constant 8 : index
    %c0_48 = arith.constant 0 : index
    %68 = vector.load %arg20[%c8, %c0_48] : memref<16x64xf32, #tpu.memory_space<vmem>>, vector<8x64xf32>
    tpu.vector_store %arg20[%c8, %c0_48], %64 {strides = array<i32>} : memref<16x64xf32, #tpu.memory_space<vmem>>, vector<8x64xf32>,
    %c5 = arith.constant 5 : index
    %c0_49 = arith.constant 0 : index
    %69 = vector.load %arg20[%c5, %c0_49] : memref<16x64xf32, #tpu.memory_space<vmem>>, vector<8x64xf32>
    %70 = vector.broadcast %21 : vector<1x64xf32> to vector<8x64xf32>
    %71 = arith.mulf %69, %70 : vector<8x64xf32>
    %c6 = arith.constant 6 : index
    %c0_50 = arith.constant 0 : index
    %72 = vector.load %arg20[%c6, %c0_50] : memref<16x64xf32, #tpu.memory_space<vmem>>, vector<8x64xf32>
    %73 = vector.broadcast %22 : vector<1x64xf32> to vector<8x64xf32>
    %74 = arith.mulf %72, %73 : vector<8x64xf32>
    %75 = arith.addf %71, %74 : vector<8x64xf32>
    %c7 = arith.constant 7 : index
    %c0_51 = arith.constant 0 : index
    %76 = vector.load %arg20[%c7, %c0_51] : memref<16x64xf32, #tpu.memory_space<vmem>>, vector<8x64xf32>
    %77 = vector.broadcast %23 : vector<1x64xf32> to vector<8x64xf32>
    %78 = arith.mulf %76, %77 : vector<8x64xf32>
    %79 = arith.addf %75, %78 : vector<8x64xf32>
    %c8_52 = arith.constant 8 : index
    %c0_53 = arith.constant 0 : index
    %80 = vector.load %arg20[%c8_52, %c0_53] : memref<16x64xf32, #tpu.memory_space<vmem>>, vector<8x64xf32>
    %81 = vector.broadcast %24 : vector<1x64xf32> to vector<8x64xf32>
    %82 = arith.mulf %80, %81 : vector<8x64xf32>
    %83 = arith.addf %79, %82 : vector<8x64xf32>
    %84 = vector.broadcast %12 : vector<1x64xf32> to vector<8x64xf32>
    %85 = arith.addf %83, %84 : vector<8x64xf32>
    %86 = arith.negf %85 : vector<8x64xf32>
    %87 = math.exp %86 : vector<8x64xf32>
    %cst_54 = arith.constant 1.000000e+00 : f32
    %88 = vector.broadcast %cst_54 : f32 to vector<8x64xf32>
    %89 = arith.addf %88, %87 : vector<8x64xf32>
    %90 = arith.divf %88, %89 : vector<8x64xf32>
    %91 = arith.mulf %85, %90 : vector<8x64xf32>
    %92 = vector.extract_strided_slice %64 {offsets = [5, 0], sizes = [3, 64], strides = [1, 1]} : vector<8x64xf32> to vector<3x64xf32>
    %c5_55 = arith.constant 5 : index
    %c0_56 = arith.constant 0 : index
    %93 = vector.load %arg20[%c5_55, %c0_56] : memref<16x64xf32, #tpu.memory_space<vmem>>, vector<3x64xf32>
    tpu.vector_store %arg20[%c5_55, %c0_56], %92 {strides = array<i32>} : memref<16x64xf32, #tpu.memory_space<vmem>>, vector<3x64xf32>,
    %94 = arith.truncf %91 : vector<8x64xf32> to vector<8x64xbf16>
    %c0_57 = arith.constant 0 : index
    %c0_58 = arith.constant 0 : index
    %c0_59 = arith.constant 0 : index
    %95 = vector.load %arg9[%c0_57, %c0_58, %c0_59] : memref<1x64x128xbf16, #tpu.memory_space<vmem>>, vector<1x64x128xbf16>
    %96 = vector.shape_cast %95 : vector<1x64x128xbf16> to vector<64x128xbf16>
    %cst_60 = arith.constant dense<0.000000e+00> : vector<8x128xf32>
    %97 = tpu.matmul %94, %96, %cst_60 {dimension_numbers = #tpu.dot_dimension_numbers<[1], [0], [0], [1], [0, 0, 1, 1], [], []>} : vector<8x64xbf16>, vector<64x128xbf16>, vector<8x128xf32> -> vector<8x128xf32>
    %98 = vector.extract_strided_slice %97 {offsets = [0, 0], sizes = [8, 16], strides = [1, 1]} : vector<8x128xf32> to vector<8x16xf32>
    %99 = vector.extract_strided_slice %97 {offsets = [0, 16], sizes = [8, 16], strides = [1, 1]} : vector<8x128xf32> to vector<8x16xf32>
    %100 = vector.extract_strided_slice %97 {offsets = [0, 32], sizes = [8, 2], strides = [1, 1]} : vector<8x128xf32> to vector<8x2xf32>
    %101 = arith.truncf %100 : vector<8x2xf32> to vector<8x2xbf16>
    %c0_61 = arith.constant 0 : index
    %c0_62 = arith.constant 0 : index
    %c0_63 = arith.constant 0 : index
    %102 = vector.load %arg10[%c0_61, %c0_62, %c0_63] : memref<1x2x64xbf16, #tpu.memory_space<vmem>>, vector<1x2x64xbf16>
    %103 = vector.shape_cast %102 : vector<1x2x64xbf16> to vector<2x64xbf16>
    %cst_64 = arith.constant dense<0.000000e+00> : vector<8x64xf32>
    %104 = tpu.matmul %101, %103, %cst_64 {dimension_numbers = #tpu.dot_dimension_numbers<[1], [0], [0], [1], [0, 0, 1, 1], [], []>} : vector<8x2xbf16>, vector<2x64xbf16>, vector<8x64xf32> -> vector<8x64xf32>
    %105 = vector.broadcast %14 : vector<1x64xf32> to vector<8x64xf32>
    %106 = arith.addf %104, %105 : vector<8x64xf32>
    %cst_65 = arith.constant 0.000000e+00 : f32
    %107 = vector.broadcast %cst_65 : f32 to vector<8x64xf32>
    %108 = arith.maximumf %106, %107 : vector<8x64xf32>
    %109 = vector.broadcast %cst_65 : f32 to vector<8x64xf32>
    %110 = arith.subf %106, %109 : vector<8x64xf32>
    %111 = arith.cmpf one, %110, %110 : vector<8x64xf32>
    %112 = vector.broadcast %cst_65 : f32 to vector<8x64xf32>
    %113 = arith.addf %106, %112 : vector<8x64xf32>
    %114 = math.absf %110 : vector<8x64xf32>
    %cst_66 = arith.constant 0.000000e+00 : f32
    %115 = vector.broadcast %cst_66 : f32 to vector<8x64xf32>
    %116 = arith.subf %115, %114 : vector<8x64xf32>
    %117 = math.exp %116 : vector<8x64xf32>
    %118 = math.log1p %117 : vector<8x64xf32>
    %119 = arith.addf %108, %118 : vector<8x64xf32>
    %120 = arith.select %111, %113, %119 : vector<8x64xi1>, vector<8x64xf32>
    %121 = vector.shape_cast %120 : vector<8x64xf32> to vector<8x1x64xf32>
    %122 = vector.shape_cast %16 : vector<16x64xf32> to vector<1x16x64xf32>
    %123 = vector.broadcast %121 : vector<8x1x64xf32> to vector<8x16x64xf32>
    %124 = vector.broadcast %122 : vector<1x16x64xf32> to vector<8x16x64xf32>
    %125 = arith.mulf %123, %124 : vector<8x16x64xf32>
    %126 = math.exp %125 : vector<8x16x64xf32>
    %127 = arith.mulf %120, %91 : vector<8x64xf32>
    %128 = vector.shape_cast %127 : vector<8x64xf32> to vector<8x1x64xf32>
    %129 = vector.shape_cast %98 : vector<8x16xf32> to vector<8x16x1xf32>
    %130 = vector.broadcast %128 : vector<8x1x64xf32> to vector<8x16x64xf32>
    %131 = vector.broadcast %129 : vector<8x16x1xf32> to vector<8x16x64xf32>
    %132 = arith.mulf %130, %131 : vector<8x16x64xf32>
    %133 = vector.shape_cast %99 : vector<8x16xf32> to vector<8x16x1xf32>
    %134 = vector.shape_cast %133 : vector<8x16x1xf32> to vector<8x16x1xf32>
    %135 = vector.broadcast %134 : vector<8x16x1xf32> to vector<8x16x64xf32>
    %c0_67 = arith.constant 0 : index
    %c0_68 = arith.constant 0 : index
    %136 = vector.load %arg21[%c0_67, %c0_68] : memref<16x64xf32, #tpu.memory_space<vmem>>, vector<16x64xf32>
    %137 = vector.extract_strided_slice %126 {offsets = [0, 0, 0], sizes = [1, 16, 64], strides = [1, 1, 1]} : vector<8x16x64xf32> to vector<1x16x64xf32>
    %138 = vector.shape_cast %137 : vector<1x16x64xf32> to vector<16x64xf32>
    %139 = arith.mulf %138, %136 : vector<16x64xf32>
    %140 = vector.extract_strided_slice %132 {offsets = [0, 0, 0], sizes = [1, 16, 64], strides = [1, 1, 1]} : vector<8x16x64xf32> to vector<1x16x64xf32>
    %141 = vector.shape_cast %140 : vector<1x16x64xf32> to vector<16x64xf32>
    %142 = arith.addf %139, %141 : vector<16x64xf32>
    %143 = vector.extract_strided_slice %135 {offsets = [0, 0, 0], sizes = [1, 16, 64], strides = [1, 1, 1]} : vector<8x16x64xf32> to vector<1x16x64xf32>
    %144 = vector.shape_cast %143 : vector<1x16x64xf32> to vector<16x64xf32>
    %145 = arith.mulf %142, %144 : vector<16x64xf32>
    %cst_69 = arith.constant dense<0.000000e+00> : vector<64xf32>
    %146 = vector.multi_reduction <add>, %145, %cst_69 [0] : vector<16x64xf32> to vector<64xf32>
    %147 = vector.shape_cast %146 : vector<64xf32> to vector<1x64xf32>
    %148 = vector.extract_strided_slice %126 {offsets = [1, 0, 0], sizes = [1, 16, 64], strides = [1, 1, 1]} : vector<8x16x64xf32> to vector<1x16x64xf32>
    %149 = vector.shape_cast %148 : vector<1x16x64xf32> to vector<16x64xf32>
    %150 = arith.mulf %149, %142 : vector<16x64xf32>
    %151 = vector.extract_strided_slice %132 {offsets = [1, 0, 0], sizes = [1, 16, 64], strides = [1, 1, 1]} : vector<8x16x64xf32> to vector<1x16x64xf32>
    %152 = vector.shape_cast %151 : vector<1x16x64xf32> to vector<16x64xf32>
    %153 = arith.addf %150, %152 : vector<16x64xf32>
    %154 = vector.extract_strided_slice %135 {offsets = [1, 0, 0], sizes = [1, 16, 64], strides = [1, 1, 1]} : vector<8x16x64xf32> to vector<1x16x64xf32>
    %155 = vector.shape_cast %154 : vector<1x16x64xf32> to vector<16x64xf32>
    %156 = arith.mulf %153, %155 : vector<16x64xf32>
    %cst_70 = arith.constant dense<0.000000e+00> : vector<64xf32>
    %157 = vector.multi_reduction <add>, %156, %cst_70 [0] : vector<16x64xf32> to vector<64xf32>
    %158 = vector.shape_cast %157 : vector<64xf32> to vector<1x64xf32>
    %159 = vector.extract_strided_slice %126 {offsets = [2, 0, 0], sizes = [1, 16, 64], strides = [1, 1, 1]} : vector<8x16x64xf32> to vector<1x16x64xf32>
    %160 = vector.shape_cast %159 : vector<1x16x64xf32> to vector<16x64xf32>
    %161 = arith.mulf %160, %153 : vector<16x64xf32>
    %162 = vector.extract_strided_slice %132 {offsets = [2, 0, 0], sizes = [1, 16, 64], strides = [1, 1, 1]} : vector<8x16x64xf32> to vector<1x16x64xf32>
    %163 = vector.shape_cast %162 : vector<1x16x64xf32> to vector<16x64xf32>
    %164 = arith.addf %161, %163 : vector<16x64xf32>
    %165 = vector.extract_strided_slice %135 {offsets = [2, 0, 0], sizes = [1, 16, 64], strides = [1, 1, 1]} : vector<8x16x64xf32> to vector<1x16x64xf32>
    %166 = vector.shape_cast %165 : vector<1x16x64xf32> to vector<16x64xf32>
    %167 = arith.mulf %164, %166 : vector<16x64xf32>
    %cst_71 = arith.constant dense<0.000000e+00> : vector<64xf32>
    %168 = vector.multi_reduction <add>, %167, %cst_71 [0] : vector<16x64xf32> to vector<64xf32>
    %169 = vector.shape_cast %168 : vector<64xf32> to vector<1x64xf32>
    %170 = vector.extract_strided_slice %126 {offsets = [3, 0, 0], sizes = [1, 16, 64], strides = [1, 1, 1]} : vector<8x16x64xf32> to vector<1x16x64xf32>
    %171 = vector.shape_cast %170 : vector<1x16x64xf32> to vector<16x64xf32>
    %172 = arith.mulf %171, %164 : vector<16x64xf32>
    %173 = vector.extract_strided_slice %132 {offsets = [3, 0, 0], sizes = [1, 16, 64], strides = [1, 1, 1]} : vector<8x16x64xf32> to vector<1x16x64xf32>
    %174 = vector.shape_cast %173 : vector<1x16x64xf32> to vector<16x64xf32>
    %175 = arith.addf %172, %174 : vector<16x64xf32>
    %176 = vector.extract_strided_slice %135 {offsets = [3, 0, 0], sizes = [1, 16, 64], strides = [1, 1, 1]} : vector<8x16x64xf32> to vector<1x16x64xf32>
    %177 = vector.shape_cast %176 : vector<1x16x64xf32> to vector<16x64xf32>
    %178 = arith.mulf %175, %177 : vector<16x64xf32>
    %cst_72 = arith.constant dense<0.000000e+00> : vector<64xf32>
    %179 = vector.multi_reduction <add>, %178, %cst_72 [0] : vector<16x64xf32> to vector<64xf32>
    %180 = vector.shape_cast %179 : vector<64xf32> to vector<1x64xf32>
    %181 = vector.extract_strided_slice %126 {offsets = [4, 0, 0], sizes = [1, 16, 64], strides = [1, 1, 1]} : vector<8x16x64xf32> to vector<1x16x64xf32>
    %182 = vector.shape_cast %181 : vector<1x16x64xf32> to vector<16x64xf32>
    %183 = arith.mulf %182, %175 : vector<16x64xf32>
    %184 = vector.extract_strided_slice %132 {offsets = [4, 0, 0], sizes = [1, 16, 64], strides = [1, 1, 1]} : vector<8x16x64xf32> to vector<1x16x64xf32>
    %185 = vector.shape_cast %184 : vector<1x16x64xf32> to vector<16x64xf32>
    %186 = arith.addf %183, %185 : vector<16x64xf32>
    %187 = vector.extract_strided_slice %135 {offsets = [4, 0, 0], sizes = [1, 16, 64], strides = [1, 1, 1]} : vector<8x16x64xf32> to vector<1x16x64xf32>
    %188 = vector.shape_cast %187 : vector<1x16x64xf32> to vector<16x64xf32>
    %189 = arith.mulf %186, %188 : vector<16x64xf32>
    %cst_73 = arith.constant dense<0.000000e+00> : vector<64xf32>
    %190 = vector.multi_reduction <add>, %189, %cst_73 [0] : vector<16x64xf32> to vector<64xf32>
    %191 = vector.shape_cast %190 : vector<64xf32> to vector<1x64xf32>
    %192 = vector.extract_strided_slice %126 {offsets = [5, 0, 0], sizes = [1, 16, 64], strides = [1, 1, 1]} : vector<8x16x64xf32> to vector<1x16x64xf32>
    %193 = vector.shape_cast %192 : vector<1x16x64xf32> to vector<16x64xf32>
    %194 = arith.mulf %193, %186 : vector<16x64xf32>
    %195 = vector.extract_strided_slice %132 {offsets = [5, 0, 0], sizes = [1, 16, 64], strides = [1, 1, 1]} : vector<8x16x64xf32> to vector<1x16x64xf32>
    %196 = vector.shape_cast %195 : vector<1x16x64xf32> to vector<16x64xf32>
    %197 = arith.addf %194, %196 : vector<16x64xf32>
    %198 = vector.extract_strided_slice %135 {offsets = [5, 0, 0], sizes = [1, 16, 64], strides = [1, 1, 1]} : vector<8x16x64xf32> to vector<1x16x64xf32>
    %199 = vector.shape_cast %198 : vector<1x16x64xf32> to vector<16x64xf32>
    %200 = arith.mulf %197, %199 : vector<16x64xf32>
    %cst_74 = arith.constant dense<0.000000e+00> : vector<64xf32>
    %201 = vector.multi_reduction <add>, %200, %cst_74 [0] : vector<16x64xf32> to vector<64xf32>
    %202 = vector.shape_cast %201 : vector<64xf32> to vector<1x64xf32>
    %203 = vector.extract_strided_slice %126 {offsets = [6, 0, 0], sizes = [1, 16, 64], strides = [1, 1, 1]} : vector<8x16x64xf32> to vector<1x16x64xf32>
    %204 = vector.shape_cast %203 : vector<1x16x64xf32> to vector<16x64xf32>
    %205 = arith.mulf %204, %197 : vector<16x64xf32>
    %206 = vector.extract_strided_slice %132 {offsets = [6, 0, 0], sizes = [1, 16, 64], strides = [1, 1, 1]} : vector<8x16x64xf32> to vector<1x16x64xf32>
    %207 = vector.shape_cast %206 : vector<1x16x64xf32> to vector<16x64xf32>
    %208 = arith.addf %205, %207 : vector<16x64xf32>
    %209 = vector.extract_strided_slice %135 {offsets = [6, 0, 0], sizes = [1, 16, 64], strides = [1, 1, 1]} : vector<8x16x64xf32> to vector<1x16x64xf32>
    %210 = vector.shape_cast %209 : vector<1x16x64xf32> to vector<16x64xf32>
    %211 = arith.mulf %208, %210 : vector<16x64xf32>
    %cst_75 = arith.constant dense<0.000000e+00> : vector<64xf32>
    %212 = vector.multi_reduction <add>, %211, %cst_75 [0] : vector<16x64xf32> to vector<64xf32>
    %213 = vector.shape_cast %212 : vector<64xf32> to vector<1x64xf32>
    %214 = vector.extract_strided_slice %126 {offsets = [7, 0, 0], sizes = [1, 16, 64], strides = [1, 1, 1]} : vector<8x16x64xf32> to vector<1x16x64xf32>
    %215 = vector.shape_cast %214 : vector<1x16x64xf32> to vector<16x64xf32>
    %216 = arith.mulf %215, %208 : vector<16x64xf32>
    %217 = vector.extract_strided_slice %132 {offsets = [7, 0, 0], sizes = [1, 16, 64], strides = [1, 1, 1]} : vector<8x16x64xf32> to vector<1x16x64xf32>
    %218 = vector.shape_cast %217 : vector<1x16x64xf32> to vector<16x64xf32>
    %219 = arith.addf %216, %218 : vector<16x64xf32>
    %220 = vector.extract_strided_slice %135 {offsets = [7, 0, 0], sizes = [1, 16, 64], strides = [1, 1, 1]} : vector<8x16x64xf32> to vector<1x16x64xf32>
    %221 = vector.shape_cast %220 : vector<1x16x64xf32> to vector<16x64xf32>
    %222 = arith.mulf %219, %221 : vector<16x64xf32>
    %cst_76 = arith.constant dense<0.000000e+00> : vector<64xf32>
    %223 = vector.multi_reduction <add>, %222, %cst_76 [0] : vector<16x64xf32> to vector<64xf32>
    %224 = vector.shape_cast %223 : vector<64xf32> to vector<1x64xf32>
    %c0_77 = arith.constant 0 : index
    %c0_78 = arith.constant 0 : index
    %225 = vector.load %arg21[%c0_77, %c0_78] : memref<16x64xf32, #tpu.memory_space<vmem>>, vector<16x64xf32>
    tpu.vector_store %arg21[%c0_77, %c0_78], %219 {strides = array<i32>} : memref<16x64xf32, #tpu.memory_space<vmem>>, vector<16x64xf32>,
    %226 = tpu.concatenate %147, %158, %169, %180, %191, %202, %213, %224 in 0 : vector<1x64xf32>, vector<1x64xf32>, vector<1x64xf32>, vector<1x64xf32>, vector<1x64xf32>, vector<1x64xf32>, vector<1x64xf32>, vector<1x64xf32> -> vector<8x64xf32>
    %227 = vector.broadcast %18 : vector<1x64xf32> to vector<8x64xf32>
    %228 = arith.mulf %91, %227 : vector<8x64xf32>
    %229 = arith.addf %226, %228 : vector<8x64xf32>
    %230 = arith.negf %67 : vector<8x64xf32>
    %231 = math.exp %230 : vector<8x64xf32>
    %cst_79 = arith.constant 1.000000e+00 : f32
    %232 = vector.broadcast %cst_79 : f32 to vector<8x64xf32>
    %233 = arith.addf %232, %231 : vector<8x64xf32>
    %234 = arith.divf %232, %233 : vector<8x64xf32>
    %235 = arith.mulf %67, %234 : vector<8x64xf32>
    %236 = arith.mulf %229, %235 : vector<8x64xf32>
    %237 = arith.truncf %236 : vector<8x64xf32> to vector<8x64xbf16>
    %c0_80 = arith.constant 0 : index
    %c0_81 = arith.constant 0 : index
    %c0_82 = arith.constant 0 : index
    %238 = vector.load %arg14[%c0_80, %c0_81, %c0_82] : memref<1x64x32xbf16, #tpu.memory_space<vmem>>, vector<1x64x32xbf16>
    %239 = vector.shape_cast %238 : vector<1x64x32xbf16> to vector<64x32xbf16>
    %cst_83 = arith.constant dense<0.000000e+00> : vector<8x32xf32>
    %240 = tpu.matmul %237, %239, %cst_83 {dimension_numbers = #tpu.dot_dimension_numbers<[1], [0], [0], [1], [0, 0, 1, 1], [], []>} : vector<8x64xbf16>, vector<64x32xbf16>, vector<8x32xf32> -> vector<8x32xf32>
    %241 = arith.truncf %240 : vector<8x32xf32> to vector<8x32xbf16>
    %242 = arith.index_cast %30 : i32 to index
    %c0_84 = arith.constant 0 : index
    %243 = vector.load %arg18[%242, %c0_84] : memref<8x32xbf16, #tpu.memory_space<vmem>>, vector<8x32xbf16>
    tpu.vector_store %arg18[%242, %c0_84], %241 {strides = array<i32>} : memref<8x32xbf16, #tpu.memory_space<vmem>>, vector<8x32xbf16>,
    %c1_i32_85 = arith.constant 1 : i32
    %244 = arith.cmpi eq, %arg1, %c1_i32_85 : i32
    %245 = arith.extui %244 : i1 to i32
    %c0_i32_86 = arith.constant 0 : i32
    %246 = arith.cmpi ne, %245, %c0_i32_86 : i32
    scf.if %246 {
      %247 = arith.addf %240, %37 : vector<8x32xf32>
      %cst_88 = arith.constant dense<0.000000e+00> : vector<8xf32>
      %248 = vector.multi_reduction <add>, %247, %cst_88 [1] : vector<8x32xf32> to vector<8xf32>
      %249 = vector.shape_cast %248 : vector<8xf32> to vector<8x1xf32>
      %cst_89 = arith.constant 3.200000e+01 : f32
      %250 = vector.broadcast %cst_89 : f32 to vector<8x1xf32>
      %251 = arith.divf %249, %250 : vector<8x1xf32>
      %252 = vector.broadcast %251 : vector<8x1xf32> to vector<8x32xf32>
      %253 = arith.subf %247, %252 : vector<8x32xf32>
      %254 = arith.mulf %253, %253 : vector<8x32xf32>
      %cst_90 = arith.constant dense<0.000000e+00> : vector<8xf32>
      %255 = vector.multi_reduction <add>, %254, %cst_90 [1] : vector<8x32xf32> to vector<8xf32>
      %256 = vector.shape_cast %255 : vector<8xf32> to vector<8x1xf32>
      %cst_91 = arith.constant 3.200000e+01 : f32
      %257 = vector.broadcast %cst_91 : f32 to vector<8x1xf32>
      %258 = arith.divf %256, %257 : vector<8x1xf32>
      %cst_92 = arith.constant 9.99999974E-6 : f32
      %259 = vector.broadcast %cst_92 : f32 to vector<8x1xf32>
      %260 = arith.addf %258, %259 : vector<8x1xf32>
      %261 = math.rsqrt %260 : vector<8x1xf32>
      %262 = vector.broadcast %261 : vector<8x1xf32> to vector<8x32xf32>
      %263 = arith.mulf %253, %262 : vector<8x32xf32>
      %264 = vector.broadcast %25 : vector<1x32xf32> to vector<8x32xf32>
      %265 = arith.mulf %263, %264 : vector<8x32xf32>
      %266 = vector.broadcast %26 : vector<1x32xf32> to vector<8x32xf32>
      %267 = arith.addf %265, %266 : vector<8x32xf32>
      %268 = arith.truncf %267 : vector<8x32xf32> to vector<8x32xbf16>
      %269 = vector.shape_cast %268 : vector<8x32xbf16> to vector<1x8x32xbf16>
      %c0_93 = arith.constant 0 : index
      %270 = arith.index_cast %30 : i32 to index
      %c0_94 = arith.constant 0 : index
      %271 = vector.load %arg17[%c0_93, %270, %c0_94] : memref<1x8x32xbf16, #tpu.memory_space<vmem>>, vector<1x8x32xbf16>
      tpu.vector_store %arg17[%c0_93, %270, %c0_94], %269 {strides = array<i32>} : memref<1x8x32xbf16, #tpu.memory_space<vmem>>, vector<1x8x32xbf16>,
    } else {
    }
    %c1_i32_87 = arith.constant 1 : i32
    return
  }
  func.func @transform_0(%arg0: i32, %arg1: i32) -> (i32, i32, i32) {
    %c0_i32 = arith.constant 0 : i32
    %c0_i32_0 = arith.constant 0 : i32
    %c0_i32_1 = arith.constant 0 : i32
    return %arg0, %c0_i32, %c0_i32_0 : i32, i32, i32
  }
  func.func @transform_1(%arg0: i32, %arg1: i32) -> (i32, i32, i32) {
    %c0_i32 = arith.constant 0 : i32
    %c0_i32_0 = arith.constant 0 : i32
    %c0_i32_1 = arith.constant 0 : i32
    return %arg1, %c0_i32, %c0_i32_0 : i32, i32, i32
  }
  func.func @transform_2(%arg0: i32, %arg1: i32) -> (i32, i32, i32) {
    %c0_i32 = arith.constant 0 : i32
    %c0_i32_0 = arith.constant 0 : i32
    %c0_i32_1 = arith.constant 0 : i32
    return %arg1, %c0_i32, %c0_i32_0 : i32, i32, i32
  }
  func.func @transform_3(%arg0: i32, %arg1: i32) -> (i32, i32, i32) {
    %c0_i32 = arith.constant 0 : i32
    %c0_i32_0 = arith.constant 0 : i32
    %c0_i32_1 = arith.constant 0 : i32
    return %arg1, %c0_i32, %c0_i32_0 : i32, i32, i32
  }
  func.func @transform_4(%arg0: i32, %arg1: i32) -> (i32, i32, i32) {
    %c0_i32 = arith.constant 0 : i32
    %c0_i32_0 = arith.constant 0 : i32
    %c0_i32_1 = arith.constant 0 : i32
    return %arg1, %c0_i32, %c0_i32_0 : i32, i32, i32
  }
  func.func @transform_5(%arg0: i32, %arg1: i32) -> (i32, i32, i32) {
    %c0_i32 = arith.constant 0 : i32
    %c0_i32_0 = arith.constant 0 : i32
    %c0_i32_1 = arith.constant 0 : i32
    return %arg1, %c0_i32, %c0_i32_0 : i32, i32, i32
  }
  func.func @transform_6(%arg0: i32, %arg1: i32) -> (i32, i32, i32) {
    %c0_i32 = arith.constant 0 : i32
    %c0_i32_0 = arith.constant 0 : i32
    %c0_i32_1 = arith.constant 0 : i32
    return %arg1, %c0_i32, %c0_i32_0 : i32, i32, i32
  }
  func.func @transform_7(%arg0: i32, %arg1: i32) -> (i32, i32, i32) {
    %c0_i32 = arith.constant 0 : i32
    %c0_i32_0 = arith.constant 0 : i32
    %c0_i32_1 = arith.constant 0 : i32
    return %arg1, %c0_i32, %c0_i32_0 : i32, i32, i32
  }
  func.func @transform_8(%arg0: i32, %arg1: i32) -> (i32, i32, i32) {
    %c0_i32 = arith.constant 0 : i32
    %c0_i32_0 = arith.constant 0 : i32
    %c0_i32_1 = arith.constant 0 : i32
    return %arg1, %c0_i32, %c0_i32_0 : i32, i32, i32
  }
  func.func @transform_9(%arg0: i32, %arg1: i32) -> (i32, i32, i32) {
    %c0_i32 = arith.constant 0 : i32
    %c0_i32_0 = arith.constant 0 : i32
    %c0_i32_1 = arith.constant 0 : i32
    return %arg1, %c0_i32, %c0_i32_0 : i32, i32, i32
  }
  func.func @transform_10(%arg0: i32, %arg1: i32) -> (i32, i32, i32) {
    %c0_i32 = arith.constant 0 : i32
    %c0_i32_0 = arith.constant 0 : i32
    %c0_i32_1 = arith.constant 0 : i32
    return %arg1, %c0_i32, %c0_i32_0 : i32, i32, i32
  }
  func.func @transform_11(%arg0: i32, %arg1: i32) -> (i32, i32, i32) {
    %c0_i32 = arith.constant 0 : i32
    %c0_i32_0 = arith.constant 0 : i32
    %c0_i32_1 = arith.constant 0 : i32
    return %arg1, %c0_i32, %c0_i32_0 : i32, i32, i32
  }
  func.func @transform_12(%arg0: i32, %arg1: i32) -> (i32, i32, i32) {
    %c0_i32 = arith.constant 0 : i32
    %c0_i32_0 = arith.constant 0 : i32
    %c0_i32_1 = arith.constant 0 : i32
    return %arg1, %c0_i32, %c0_i32_0 : i32, i32, i32
  }
  func.func @transform_13(%arg0: i32, %arg1: i32) -> (i32, i32) {
    %c0_i32 = arith.constant 0 : i32
    %c0_i32_0 = arith.constant 0 : i32
    %c0_i32_1 = arith.constant 0 : i32
    return %c0_i32, %c0_i32_0 : i32, i32
  }
  func.func @transform_14(%arg0: i32, %arg1: i32) -> (i32, i32) {
    %c0_i32 = arith.constant 0 : i32
    %c0_i32_0 = arith.constant 0 : i32
    %c0_i32_1 = arith.constant 0 : i32
    return %c0_i32, %c0_i32_0 : i32, i32
  }
  func.func @transform_15(%arg0: i32, %arg1: i32) -> (i32, i32, i32) {
    %c0_i32 = arith.constant 0 : i32
    %c0_i32_0 = arith.constant 0 : i32
    %c0_i32_1 = arith.constant 0 : i32
    return %arg0, %c0_i32, %c0_i32_0 : i32, i32, i32
  }
}

</mosaic_0001>

<bundles_post_ra>
// kernel: tpu_custom_call.1
= control target key start
LH: loop header
LB: loop body
LE: loop exit
PB: predicated region body
PF: predicated region fallthrough
CT: control target
= control target key end

     0   :  { %s3268_s0 = inlined_call_operand.hbm [shape: bf16[2,8,32], index: 0, kind: input, shape index: {}]   ;;  %s3269_s1 = inlined_call_operand.vmem [shape: f32[2,1,32], index: 1, kind: input, shape index: {}]   ;;  %s3270_s2 = inlined_call_operand.vmem [shape: f32[2,1,32], index: 2, kind: input, shape index: {}]   ;;  %s3271_s3 = inlined_call_operand.vmem [shape: bf16[2,32,64], index: 3, kind: input, shape index: {}]   ;;  %s3272_s4 = inlined_call_operand.hbm [shape: bf16[2,32,64], index: 4, kind: input, shape index: {}]   ;;  %s3273_s5 = inlined_call_operand.hbm [shape: f32[2,4,64], index: 5, kind: input, shape index: {}]   ;;  %s3274_s6 = inlined_call_operand.vmem [shape: f32[2,1,64], index: 6, kind: input, shape index: {}]   ;;  %s3275_s7 = inlined_call_operand.vmem [shape: bf16[2,64,128], index: 7, kind: input, shape index: {}]   ;;  %s3276_s8 = inlined_call_operand.hbm [shape: bf16[2,2,64], index: 8, kind: input, shape index: {}]   ;;  %s3277_s9 = inlined_call_operand.hbm [shape: f32[2,1,64], index: 9, kind: input, shape index: {}]   ;;  %s3278_s10 = inlined_call_operand.hbm [shape: f32[2,16,64], index: 10, kind: input, shape index: {}]   ;;  %s3279_s11 = inlined_call_operand.vmem [shape: f32[2,1,64], index: 11, kind: input, shape index: {}]   ;;  %s3280_s12 = inlined_call_operand.vmem [shape: bf16[2,64,32], index: 12, kind: input, shape index: {}]   ;;  %s3281_s13 = inlined_call_operand.vmem [shape: f32[1,32], index: 13, kind: input, shape index: {}]   ;;  %s3282_s14 = inlined_call_operand.vmem [shape: f32[1,32], index: 14, kind: input, shape index: {}]   ;;  %s3283_s15 = inlined_call_operand.hbm [shape: bf16[2,8,32], index: 15, kind: output, shape index: {}]  }
   0x1   :  { %3301 = sst [smem:[#allocation38_spill]] %s3268_s0 }
   0x2   :  { %3302 = sst [smem:[#allocation39_spill]] %s3269_s1 }
   0x3   :  { %3303 = sst [smem:[#allocation40_spill]] %s3270_s2 }
   0x4   :  { %3304 = sst [smem:[#allocation41_spill]] %s3271_s3 }
   0x5   :  { %3305 = sst [smem:[#allocation42_spill]] %s3272_s4 }
   0x6   :  { %3306 = sst [smem:[#allocation43_spill]] %s3273_s5 }
   0x7   :  { %3307 = sst [smem:[#allocation44_spill]] %s3274_s6 }
   0x8   :  { %3308 = sst [smem:[#allocation45_spill]] %s3275_s7 }
   0x9   :  { %3309 = sst [smem:[#allocation46_spill]] %s3276_s8 }
   0xa   :  { %3310 = sst [smem:[#allocation47_spill]] %s3277_s9 }
   0xb   :  { %3311 = sst [smem:[#allocation48_spill]] %s3278_s10 }
   0xc   :  { %3312 = sst [smem:[#allocation49_spill]] %s3279_s11 }
   0xd   :  { %3313 = sst [smem:[#allocation50_spill]] %s3280_s12 }
   0xe   :  { %3314 = sst [smem:[#allocation51_spill]] %s3281_s13 }
   0xf   :  { %3315 = sst [smem:[#allocation52_spill]] %s3282_s14 }
  0x10   :  { %3316 = sst [smem:[#allocation53_spill]] %s3283_s15 }
  0x11   :  { %20 = vsyncpa [#allocation7], 0 }
  0x12   :  { %22 = vsyncpa [#allocation7 + $0x1], 0 }
  0x13   :  { %23 = vsyncpa [#allocation10], 0 }
  0x14   :  { %25 = vsyncpa [#allocation10 + $0x1], 0 }
  0x15   :  { %26 = vsyncpa [#allocation13], 0 }
  0x16   :  { %28 = vsyncpa [#allocation13 + $0x1], 0 }
  0x17   :  { %29 = vsyncpa [#allocation16], 0 }
  0x18   :  { %31 = vsyncpa [#allocation16 + $0x1], 0 }
  0x19   :  { %32 = vsyncpa [#allocation8], 0 }
  0x1a   :  { %34 = vsyncpa [#allocation8 + $0x1], 0  ;;  %s2647_s18 = smov 0   ;;  %s2649_s19 = smov 0  }
  0x1b   :  { %s2651_s20 = smov 0   ;;  %s2653_s21 = smov 0  }
  0x1c   :  { %s2655_s22 = smov 0   ;;  %s2657_s23 = smov 0  }
  0x1d   :  { %s2659_s24 = smov 0   ;;  %s2661_s25 = smov 0  }
  0x1e   :  { %s2663_s26 = smov 0   ;;  %s2665_s27 = smov 0  }
  0x1f   :  { %s2667_s28 = smov 0  }
  0x20 LB: > { %3317 = sst [smem:[#allocation23_spill]] %s2521_s19  ;;  %p67_p0 = scmp.eq.s32.totalorder %s2557_s28, 0  ;;  %s2557_s28 = sphi %s2667_s28, %s40_s28   ;;  %s2553_s27 = sphi %s2665_s27, %s3382_s27   ;;  %s2549_s26 = sphi %s2663_s26, %s3381_s26   ;;  %s2545_s25 = sphi %s2661_s25, %s3380_s25   ;;  %s2541_s24 = sphi %s2659_s24, %s3379_s24   ;;  %s2537_s23 = sphi %s2657_s23, %s3378_s23   ;;  %s2533_s22 = sphi %s2655_s22, %s3377_s22   ;;  %s2529_s21 = sphi %s2653_s21, %s3376_s21   ;;  %s2525_s20 = sphi %s2651_s20, %s3375_s20   ;;  %s2521_s19 = sphi %s2649_s19, %s3374_s19   ;;  %s2517_s18 = sphi %s2647_s18, %s3373_s18  }
  0x21   : > { %3318 = sst [smem:[#allocation24_spill]] %s2525_s20  ;;  %p170_p1 = scmp.ne.s32.totalorder %s2525_s20, %s2521_s19 }
  0x22   : > { %3319 = sst [smem:[#allocation25_spill]] %s2529_s21  ;;  %p2071_p2 = scmp.lt.s32.totalorder %s2557_s28, 4 }
  0x23   : > { %3320 = sst [smem:[#allocation26_spill]] %s2533_s22  ;;  %s521_s30 = sand.u32 1, %s2557_s28  }
  0x24   : > { %3321 = sst [smem:[#allocation27_spill]] %s2537_s23  ;;  %p172_p3 = por %p170_p1, %p67_p0 }
  0x25   : > { %3322 = sst [smem:[#allocation28_spill]] %s2541_s24  ;;  %s2711_s16 = sand.u32 1, %s2525_s20  }
  0x26   : > { %3323 = sst [smem:[#allocation29_spill]] %s2545_s25  ;;  %s3286_s17 = sshll.u32 %s2549_s26, 4 }
  0x27   : > { %3324 = sst [smem:[#allocation30_spill]] %s2549_s26  ;;  %s3285_s15 = sshll.u32 %s2711_s16, 4 }
  0x28   : > { %3325 = sst [smem:[#allocation31_spill]] %s2553_s27  ;;  %s525_s29 = scalar_lea.vmem [#allocation9], %s3285_s15 }
  0x29   : > { %s3326_s4 = sld [smem:[#allocation42_spill]]  ;;  %s533_s11 = sshll.u32 %s525_s29, 4  ;;  %s534_s11 = int_to_ptr.vmem [resolvable:$true] %s533_s11 }
  0x2a   : > { %p2724_p4 = pnand %p2071_p2, %p172_p3  ;;  %p1944_p5 = scmp.ge.s32.totalorder %s2557_s28, 1 }
  0x2b   : > { %s2729_s3 = scalar_lea.sflag [#allocation10], %s521_s30  ;;  %s2560_s14 = smov 4  }
  0x2c   : > { %p644_p6 = scmp.lt.s32.totalorder %s2557_s28, 5  ;;  %s3328_s8 = sld [smem:[#allocation46_spill]] }
  0x2d   : > { %s49_s25 = sadd.s32 1, %s2549_s26  ;;  %s52_s29 = sadd.s32 1, %s2553_s27 }
  0x2e   : > { %p2739_p7 = pnand %p1944_p5, %p644_p6  ;;  %p50_p8 = scmp.ge.s32.totalorder %s49_s25, 2 }
  0x2f   : > { %s530_s13 = scalar_lea.hbm %s3326_s4, %s3286_s17  ;;  %p66_p9 = scmp.ne.s32.totalorder %s2537_s23, %s2533_s22 }
  0x30   : > { %s531_s12 = sshll.u32 %s530_s13, 4  ;;  %s2559_s13 = smov 64   ;;  %s532_s12 = int_to_ptr.hbm [resolvable:$true] %s531_s12 }
  0x31   : > { %2054 = dma.hbm_to_vmem [thread:$0]  (!%p2724_p4), %s532_s12, 256, %s534_s11, %s2729_s3, %s2559_s13, %s2559_s13, %s2560_s14  }
  0x32   : > { %s582_s15 = scalar_lea.hbm %s3328_s8, %s2549_s26  ;;  %s579_s11 = scalar_lea.vmem [#allocation12], %s2711_s16 }
  0x33   : > { %s584_s4 = sshll.u32 %s582_s15, 4  ;;  %s586_s12 = sshll.u32 %s579_s11, 4  ;;  %s585_s4 = int_to_ptr.hbm [resolvable:$true] %s584_s4  ;;  %s587_s12 = int_to_ptr.vmem [resolvable:$true] %s586_s12 }
  0x34   : > { %s2744_s13 = scalar_lea.sflag [#allocation13], %s521_s30  ;;  %s2750_s14 = sadd.s32 4294967295, %s2557_s28  }
  0x35   : > { %2060 = dma.hbm_to_vmem [thread:$0]  (!%p2724_p4), %s585_s4, 16, %s587_s12, %s2744_s13  }
  0x36   : > { %s1931_s15 = sadd.s32 4294967294, %s2557_s28   ;;  %s59_s11 = sadd.s32 1, %s2537_s23 }
  0x37   : > { %s3384_s25 = smov (%p50_p8, %s49_s25), 0  ;;  %s3386_s29 = smov (!%p50_p8, %s52_s29), %s2553_s27 }
  0x38   : > { %3330 = sst [smem:[#allocation32_spill]] %s3384_s25  ;;  %p2766_p10 = por %p67_p0, %p66_p9 }
  0x39   : > { %p72_p11 = scmp.ne.s32.totalorder %s2533_s22, %s2529_s21  ;;  %p54_p12 = scmp.ge.s32.totalorder %s3386_s29, 2 }
  0x3a   : > { %p73_p13 = scmp.eq.s32.totalorder %s2750_s14, 0  ;;  %s160_s30 = ssub.s32 %s2549_s26, %s3384_s25 }
  0x3b   : > { %p176_p1 = scmp.ne.s32.totalorder %s2521_s19, %s2517_s18  ;;  %s3388_s29 = smov (%p54_p12, %s3386_s29), 0 }
  0x3c   : > { %3332 = sst [smem:[#allocation33_spill]] %s3388_s29  ;;  %p2782_p3 = por %p73_p13, %p72_p11 }
  0x3d   : > { %p161_p0 = scmp.eq.s32.totalorder %s160_s30, 0  ;;  %s56_s8 = ssub.s32 %s2553_s27, %s3388_s29 }
  0x3e   : > { %p2788_p5 = por %p176_p1, %p73_p13  ;;  %p57_p6 = scmp.eq.s32.totalorder %s56_s8, 0 }
  0x3f   : > { %p450_p8 = scmp.eq.s32.totalorder %s2750_s14, 3  ;;  %s3336_s25 = sadd.s32 1, %s2525_s20 }
  0x40   : > { %s3334_s6 = scalar_select %p2788_p5, 1, 0 }
  0x41   : > { %s2796_s18 = scalar_select %p161_p0, %s2525_s20, %s3336_s25  }
  0x42   : > { %3335 = sst [smem:[#allocation34_spill]] %s3334_s6  ;;  %p2804_p12 = por %p450_p8, %p66_p9 }
  0x43   : > { %3337 = sst [smem:[#allocation35_spill]] %s2796_s18  ;;  %p456_p13 = scmp.eq.s32.totalorder %s1931_s15, 3 }
  0x44   : > { %s2799_s2 = scalar_select %p57_p6, %s2537_s23, %s59_s11  }
  0x45   : > { %s482_s30 = sand.u32 1, %s2537_s23   ;;  %s1935_s29 = sshll.u32 %s2553_s27, 2 }
  0x46   : > { %3338 = sst [smem:[#allocation36_spill]] %s2799_s2  ;;  %p2813_p1 = por %p456_p13, %p72_p11 }
  0x47   : > { %s1934_s24 = sshll.u32 %s482_s30, 2  ;;  %s3342_s0 = sld [smem:[#allocation38_spill]] }
  0x48   : > { %s3340_s8 = scalar_select %p2813_p1, 1, 0 }
  0x49   : > { %s486_s2 = scalar_lea.vmem [#allocation6], %s1934_s24  ;;  %p2049_p9 = pnand %p2071_p2, %p2766_p10 }
  0x4a   : > { %3341 = sst [smem:[#allocation37_spill]] %s3340_s8  ;;  %s494_s15 = sshll.u32 %s486_s2, 4  ;;  %s495_s15 = int_to_ptr.vmem [resolvable:$true] %s494_s15 }
  0x4b   : > { %s1939_s27 = sshll.u32 %s2711_s16, 2  ;;  %s1940_s23 = sshll.u32 %s2549_s26, 2 }
  0x4c   : > { %s483_s20 = scalar_lea.sflag [#allocation7], %s482_s30  ;;  %s3343_s5 = sld [smem:[#allocation43_spill]] }
  0x4d   : > { %s490_s18 = scalar_lea.hbm %s3342_s0, %s1935_s29  ;;  %s547_s25 = scalar_lea.vmem [#allocation11], %s1939_s27 }
  0x4e   : > { %s492_s11 = sshll.u32 %s490_s18, 4  ;;  %s555_s24 = sshll.u32 %s547_s25, 4  ;;  %s493_s11 = int_to_ptr.hbm [resolvable:$true] %s492_s11  ;;  %s556_s24 = int_to_ptr.vmem [resolvable:$true] %s555_s24 }
  0x4f   : > { %2051 = dma.hbm_to_vmem [thread:$0]  (!%p2049_p9), %s493_s11, 64, %s495_s15, %s483_s20  }
  0x50   : > { %s3344_s9 = sld [smem:[#allocation47_spill]]  ;;  %s596_s30 = scalar_lea.vmem [#allocation14], %s2711_s16 }
  0x51   : > { %s603_s20 = sshll.u32 %s596_s30, 4  ;;  %s3346_s10 = sld [smem:[#allocation48_spill]]  ;;  %s604_s20 = int_to_ptr.vmem [resolvable:$true] %s603_s20 }
  0x52   : > { %s551_s18 = scalar_lea.hbm %s3343_s5, %s1940_s23  ;;  %s3345_s23 = sshll.u32 %s2549_s26, 4 }
  0x53   : > { %s553_s0 = sshll.u32 %s551_s18, 4  ;;  %s3347_s18 = sshll.u32 %s2711_s16, 4  ;;  %s554_s0 = int_to_ptr.hbm [resolvable:$true] %s553_s0 }
  0x54   : > { %2057 = dma.hbm_to_vmem [thread:$0]  (!%p2724_p4), %s554_s0, 64, %s556_s24, %s2729_s3  }
  0x55   : > { %s614_s0 = scalar_lea.vmem [#allocation15], %s3347_s18  ;;  %s611_s25 = scalar_lea.sflag [#allocation16], %s2711_s16 }
  0x56   : > { %s599_s8 = scalar_lea.hbm %s3344_s9, %s2549_s26  ;;  %s622_s3 = sshll.u32 %s614_s0, 4  ;;  %s623_s3 = int_to_ptr.vmem [resolvable:$true] %s622_s3 }
  0x57   : > { %s601_s11 = sshll.u32 %s599_s8, 4  ;;  %s619_s6 = scalar_lea.hbm %s3346_s10, %s3345_s23  ;;  %s602_s11 = int_to_ptr.hbm [resolvable:$true] %s601_s11 }
  0x58   : > { %2063 = dma.hbm_to_vmem [thread:$0]  (!%p2724_p4), %s602_s11, 16, %s604_s20, %s2744_s13  }
  0x59   : > { %s620_s29 = sshll.u32 %s619_s6, 4  ;;  %s2561_s24 = smov 128   ;;  %s621_s29 = int_to_ptr.hbm [resolvable:$true] %s620_s29 }
  0x5a   : > { %s2562_s2 = smov 8   ;;  %648 = sbr.rel (%p2739_p7) target bundleno = 1509 (0x5e5), region = 80 }
  0x5b   : > { %2066 = dma.hbm_to_vmem [thread:$0]  (!%p2724_p4), %s621_s29, 256, %s623_s3, %s611_s25, %s2561_s24, %s2561_s24, %s2562_s2  }
  0x5c   : > { %s2853_s13 = sand.u32 (!%p2739_p7), 1, %s2533_s22  }
  0x5d   : > { %s3296_s8 = sshll.u32 (!%p2739_p7), %s2853_s13, 2  ;;  %s651_s4 = scalar_lea.sflag (!%p2739_p7), [#allocation7], %s2853_s13 }
  0x5e   : > { %s2859_s30 = scalar_lea.vmem (!%p2739_p7), [#allocation6], %s3296_s8 }
  0x5f   : > { %2496 = dma.done.wait (%p2782_p3), %s651_s4, 64  }
  0x60   : > { %2498 = vsyncadd (%p2782_p3), %s651_s4, 4294967232  ;;  %s660_s16 = sand.u32 1, %s2750_s14   ;;  %s2867_s17 = sand.u32 1, %s2521_s19  }
  0x61   : > { %s1946_s20 = sshll.u32 %s2867_s17, 4  ;;  %s661_s11 = scalar_lea.sflag [#allocation10], %s660_s16 }
  0x62   : > { %s2870_s23 = scalar_lea.vmem [#allocation9], %s1946_s20 }
  0x63   : > { %2500 = dma.done.wait (%p2788_p5), %s661_s11, 320  }
  0x64   : > { %2502 = vsyncadd (%p2788_p5), %s661_s11, 4294966976  ;;  %s1947_s12 = sshll.u32 %s2867_s17, 2  ;;  %s681_s15 = scalar_lea.sflag [#allocation13], %s660_s16 }
  0x65   : > { %s2877_s27 = scalar_lea.vmem [#allocation11], %s1947_s12 }
  0x66   : > { %2504 = dma.done.wait (%p2788_p5), %s681_s15, 32  }
  0x67   : > { %2506 = vsyncadd (%p2788_p5), %s681_s15, 4294967264  ;;  %s699_s29 = scalar_lea.sflag [#allocation16], %s2867_s17  ;;  %s2886_s18 = scalar_lea.vmem [#allocation15], %s1946_s20 }
  0x68   : > { %2508 = dma.done.wait (%p2788_p5), %s699_s29, 256  }
  0x69   : > { %2510 = vsyncadd (%p2788_p5), %s699_s29, 4294967040  ;;  %s3349_s0 = sld [smem:[#allocation28_spill]] }
  0x6a   : > { %s3352_s6 = sld [smem:[#allocation44_spill]] }
  0x6b   : > { %s3353_s9 = sld [smem:[#allocation41_spill]] }
  0x6c   : > { %s3354_s22 = sld [smem:[#allocation45_spill]] }
  0x6d   : > { %s3355_s16 = sld [smem:[#allocation49_spill]] }
  0x6e   : > { %s3356_s21 = sld [smem:[#allocation50_spill]] }
  0x6f   : > { %p800_p2 = scmp.lt.s32.totalorder %s3349_s0, 1  ;;  %p1956_p4 = scmp.ne.s32.totalorder %s3349_s0, 0 }
  0x71   : > { %s2894_s3 = scalar_select %p800_p2, %s3349_s0, 1 }
  0x73   : > { %s2019_s12 = sshll.u32 %s2894_s3, 4  ;;  %s813_s14 = scalar_lea.vmem %s3352_s6, %s2894_s3 }
  0x74   : > { %s2912_s10 = scalar_lea.vmem %s3353_s9, %s2019_s12  ;;  %s2020_s25 = sshll.u32 %s2894_s3, 5 }
  0x75   : > { %s2918_s19 = scalar_lea.vmem %s3354_s22, %s2020_s25  ;;  %s821_s20 = scalar_lea.vmem %s3355_s16, %s2894_s3 }
  0x76   : > { %s2927_s15 = scalar_lea.vmem %s3356_s21, %s2020_s25  ;;  %s3357_s6 = sshll.u32 %s2853_s13, 2 }
  0x77   : > { %s2931_s29 = scalar_lea.vmem [#allocation17], %s3357_s6  ;;  %831 = sbr.rel (%p1956_p4) target bundleno = 127 (0x7f), region = 108 }
  0x7c   : > { %v832_v0 = vld [vmem:[%s2859_s30] sm:$0xf]  ;;  %vm833_vm0 = vcmask 257024   ;;  %v2563_v1 = vmov 0  }
  0x7d   : > { %834 = vst.msk [vmem:[#allocation2] sm:$0xf] %vm833_vm0, %v832_v0 }
  0x7e   : > { %835 = vst.msk [vmem:[#allocation3] sm:$0xf] %vm833_vm0, %v2563_v1 }
  0x7f PF: > { %vm858_vm1 = vcmask 261120   ;;  %v2564_v8 = vmov 32.0   ;;  %s3358_s21 = sld [smem:[#allocation51_spill]]  ;;  %v2023_v22 = vld [vmem:[%s2912_s10 + $0x8] sm:$0xff]  ;;  %v2022_v24 = vld [vmem:[%s2912_s10] sm:$0xff]  ;;  %vm836_vm3 = vcmask 523264  }
  0x80   : > { %2193 = vrcp.f32 %v2564_v8  ;;  %s3359_s8 = sld [smem:[#allocation52_spill]]  ;;  %v2025_v23 = vld [vmem:[%s2870_s23 + $0x8] sm:$0xff]  ;;  %922 = vmatpush.bf16.msra.mxu0 %v2023_v22  ;;  %v2024_v25 = vld [vmem:[%s2870_s23] sm:$0xff]  ;;  %v2565_v27 = vmov 0.0   ;;  %vm998_vm7 = vcmask 523269   ;;  %s3365_s2 = scalar_lea.vmem [#allocation12], %s2867_s17 }
  0x81   : > { %951 = vmatpush.bf16.msra.mxu1 %v2025_v23  ;;  %839 = vst.msk [vmem:[#allocation4] sm:$0xff] %vm836_vm3, %v2565_v27  ;;  %s3360_s23 = sld [smem:[#allocation39_spill]]  ;;  %v2029_v43 = vld [vmem:[%s2918_s19 + $0x18] sm:$0xff]  ;;  %v2028_v44 = vld [vmem:[%s2918_s19 + $0x10] sm:$0xff]  ;;  %v2027_v48 = vld [vmem:[%s2918_s19 + $0x8] sm:$0xff]  ;;  %vm1061_vm12 = vcmask 1040384  }
  0x82   : > { %837 = vst.msk [vmem:[#allocation5] sm:$0xff] %vm836_vm3, %v2565_v27  ;;  %s3362_s12 = sld [smem:[#allocation40_spill]]  ;;  %1040 = vmatpush.bf16.msra.mxu2 %v2029_v43  ;;  %v847_v47 = vld [vmem:[%s2877_s27] sm:$0xf]  ;;  %v2026_v51 = vld [vmem:[%s2918_s19] sm:$0xff]  ;;  %vm1057_vm13 = vcmask 15360  }
  0x83   : > { %838 = vst.msk [vmem:[#allocation5 + $0x8] sm:$0xff] %vm836_vm3, %v2565_v27  ;;  %v960_v49 = vperm.slane %v847_v47, 0  ;;  %v963_v50 = vperm.slane %v847_v47, 1  ;;  %v967_v52 = vperm.slane %v847_v47, 2  ;;  %v971_v60 = vperm.slane %v847_v47, 3  ;;  %s3366_s16 = scalar_lea.vmem [#allocation14], %s2867_s17 }
  0x84   : > { %v850_v2 = vld [vmem:[#allocation2] sm:$0xf]  ;;  %923 = vmatpush.bf16.msra.mxu0 %v2022_v24  ;;  %vm1534_vm0 = vcmask 1041408  }
  0x85   : > { %v852_v3 = vld [vmem:[#allocation3] sm:$0xf]  ;;  %v851_v4 = vunpack.c.l.bf16 %v850_v2  ;;  %v2947_v20 = vld [vmem:[%s3358_s21] sm:$0x1]  ;;  %952 = vmatpush.bf16.msra.mxu1 %v2024_v25 }
  0x86   : > { %v853_v5 = vunpack.c.l.bf16 %v852_v3  ;;  %v2194_v9 = vpop.eup %2193  ;;  %v2952_v21 = vld [vmem:[%s3359_s8] sm:$0x1]  ;;  %1041 = vmatpush.bf16.msra.mxu2 %v2028_v44 }
  0x87   : > { %v863_v10 = vmul.f32 32.0, %v2194_v9  ;;  %vm867_vm2 = vweird.f32 %v2194_v9  ;;  %s3361_s0 = scalar_lea.vmem %s3360_s23, %s2894_s3  ;;  %v2190_v2 = vld [vmem:[%s813_s14] ss:$0 sm:$0xff]  ;;  %s2566_s14 = smov 96  }
  0x88   : > { %v2935_v6 = vadd.f32 %v853_v5, %v851_v4  ;;  %v2188_v36 = vld [vmem:[%s3361_s0] ss:$0 sm:$0xff]  ;;  %s3363_s25 = scalar_lea.vmem %s3362_s12, %s2894_s3  ;;  %s3368_s3 = sld [smem:[#allocation28_spill]] }
  0x89   : > { %v864_v11 = vsub.f32 1.0, %v863_v10  ;;  %v2189_v39 = vld [vmem:[%s3363_s25] ss:$0 sm:$0xff] }
  0x8a   : > { %v859_v7 = vsel %vm858_vm1, %v2935_v6, 0.0  ;;  %1042 = vmatpush.bf16.msra.mxu2 %v2027_v48 }
  0x8b   : > { %860 = vadd.xlane.f32.xlu0 %v859_v7  ;;  %v865_v12 = vmul.f32 %v2194_v9, %v864_v11  ;;  %v1178_v7 = vlaneseq }
  0x8d   : > { %v866_v13 = vadd.f32 %v2194_v9, %v865_v12  ;;  %v2987_v8 = vshrl.u32 %v1178_v7, 7 }
  0x8e   : > { %1043 = vmatpush.bf16.msra.mxu2 %v2026_v51  ;;  %v2191_v51 = vld [vmem:[%s3366_s16] ss:$0 sm:$0xff]  ;;  %p2012_p7 = scmp.ne.s32.totalorder %s3368_s3, 1 }
  0x8f   : > { %v2939_v14 = vsel %vm867_vm2, %v2194_v9, %v866_v13  ;;  %v2990_v9 = vadd.s32 8, %v2987_v8  ;;  %2169 = vset.pattern.permute.xlu1 %v2987_v8  ;;  %vm856_vm2 = vcmask 257024  }
  0x91   : > { %2172 = vset.pattern.permute.xlu0 %v2990_v9  ;;  %2170 = vset.pattern.permute.xlu2 %v2990_v9 }
  0xfe   : > { %v861_v15 = vpop.xlane.xlu0 %860 }
  0xff   : > { %v869_v16 = vmul.f32 %v2939_v14, %v861_v15 }
 0x101   : > { %v870_v17 = vsub.f32 %v2935_v6, %v869_v16 }
 0x103   : > { %v871_v18 = vmul.f32 %v870_v17, %v870_v17 }
 0x105   : > { %v872_v19 = vsel %vm858_vm1, %v871_v18, 0.0 }
 0x106   : > { %873 = vadd.xlane.f32.xlu0 %v872_v19 }
 0x179   : > { %v874_v26 = vpop.xlane.xlu0 %873 }
 0x17a   : > { %v875_v28 = vmul.f32 %v874_v26, %v2939_v14 }
 0x17c   : > { %v876_v29 = vadd.f32 1e-05, %v875_v28 }
 0x17e   : > { %2195 = vrsqrt.f32 %v876_v29  ;;  %vm883_vm5 = vweird.f32 %v876_v29 }
 0x184   : > { %v2196_v30 = vpop.eup %2195 }
 0x185   : > { %v878_v31 = vmul.f32 %v2196_v30, %v876_v29  ;;  %vm884_vm4 = vweird.f32 %v2196_v30 }
 0x186   : > { %vm885_vm6 = vmor %vm883_vm5, %vm884_vm4  ;;  %vm1536_vm4 = vcmask 1042432   ;;  %vm1538_vm5 = vcmask 1043456  }
 0x187   : > { %v879_v32 = vmul.f32 %v2196_v30, %v878_v31  ;;  %v1315_v31 = vadd.s32 16, %v2987_v8 }
 0x189   : > { %v880_v33 = vmul.f32 0.5, %v879_v32 }
 0x18b   : > { %v881_v34 = vsub.f32 1.5, %v880_v33 }
 0x18d   : > { %v882_v35 = vmul.f32 %v2196_v30, %v881_v34  ;;  %v1321_v34 = vadd.s32 24, %v2987_v8 }
 0x18f   : > { %v886_v37 = vsel %vm885_vm6, %v2196_v30, %v882_v35  ;;  %vm1540_vm6 = vcmask 1044480  }
 0x190   : > { %v887_v38 = vmul.f32 %v886_v37, %v870_v17 }
 0x192   : > { %v891_v40 = vmul.f32 %v2188_v36, %v887_v38 }
 0x194   : > { %v895_v41 = vadd.f32 %v2189_v39, %v891_v40  ;;  %v1050_v39 = vld [vmem:[%s3365_s2] sm:$0x1] }
 0x195   : > { %v1063_v40 = vsel %vm1061_vm12, %v1050_v39, 0 }
 0x196   : > { %v896_v42 = vpack.c.bf16 %v895_v41, %v895_v41  ;;  %1072 = vmatpush.bf16.msra.mxu3 %v1063_v40 }
 0x198   : > { %1965 = vmatmul.msk.bf16.vlgmr.msra.gmra.mxu0 %vm858_vm1, %v896_v42  ;;  %1974 = vmatmul.msk.bf16.vlgmr.msra.gmra.mxu1 %vm858_vm1, %v896_v42 }
 0x215   : > { %v925_v45 = vpop.f32.mrf.mxu0  ;;  %v2976_v46 = vpop.f32.mrf.mxu1 }
 0x216   : > { %958 = vst.msk [vmem:[#allocation4 + $0x8] sm:$0xff] %vm836_vm3, %v925_v45 }
 0x21d   : > { %v959_v53 = vld [vmem:[#allocation4 + $0x5] sm:$0xff]  ;;  %v927_v56 = vpop.f32.mrf.mxu0  ;;  %v956_v57 = vpop.f32.mrf.mxu1 }
 0x21e   : > { %v962_v54 = vld [vmem:[#allocation4 + $0x6] sm:$0xff]  ;;  %v961_v58 = vmul.f32 %v960_v49, %v959_v53 }
 0x21f   : > { %v966_v55 = vld [vmem:[#allocation4 + $0x7] sm:$0xff]  ;;  %v964_v59 = vmul.f32 %v963_v50, %v962_v54 }
 0x220   : > { %999 = vst.msk [vmem:[#allocation4] sm:$0xe0] %vm998_vm7, %v925_v45  ;;  %v970_v61 = vld [vmem:[#allocation4 + $0x8] sm:$0xff]  ;;  %v968_v63 = vmul.f32 %v967_v52, %v966_v55 }
 0x221   : > { %v965_v62 = vadd.f32 %v964_v59, %v961_v58  ;;  %v972_v1 = vmul.f32 %v971_v60, %v970_v61 }
 0x223   : > { %v969_v0 = vadd.f32 %v968_v63, %v965_v62 }
 0x225   : > { %v973_v3 = vadd.f32 %v972_v1, %v969_v0 }
 0x227   : > { %v977_v4 = vadd.f32 %v2190_v2, %v973_v3 }
 0x229   : > { %v1975_v5 = vmul.f32 -1.442695, %v977_v4 }
 0x22b   : > { %2197 = vpow2.f32 %v1975_v5 }
 0x231   : > { %v2198_v10 = vpop.eup %2197 }
 0x232   : > { %v981_v11 = vadd.f32 1.0, %v2198_v10 }
 0x234   : > { %2199 = vrcp.f32 %v981_v11  ;;  %v993_v16 = vand.u32 2147483648, %v981_v11  ;;  %v991_v18 = vand.u32 2147483647, %v981_v11  ;;  %vm987_vm9 = vweird.f32 %v981_v11 }
 0x236   : > { %v994_v22 = vor.u32 1.1754944e-38, %v993_v16  ;;  %vm992_vm11 = vcmp.eq.f32.partialorder %v991_v18, 8.507059e+37 }
 0x23a   : > { %v2200_v12 = vpop.eup %2199 }
 0x23b   : > { %v983_v13 = vmul.f32 %v2200_v12, %v981_v11  ;;  %vm988_vm8 = vweird.f32 %v2200_v12  ;;  %v1994_v11 = vmul.f32 -1.442695, %v2976_v46 }
 0x23c   : > { %vm989_vm10 = vmor %vm987_vm9, %vm988_vm8  ;;  %vm1542_vm9 = vcmask 1045504  }
 0x23d   : > { %v984_v15 = vsub.f32 1.0, %v983_v13 }
 0x23f   : > { %v985_v17 = vmul.f32 %v2200_v12, %v984_v15 }
 0x241   : > { %v986_v19 = vadd.f32 %v2200_v12, %v985_v17 }
 0x243   : > { %v990_v23 = vsel %vm989_vm10, %v2200_v12, %v986_v19  ;;  %v845_v19 = vld [vmem:[%s2886_s18 + $0x8] sm:$0xff] }
 0x244   : > { %v995_v24 = vsel %vm992_vm11, %v994_v22, %v990_v23 }
 0x245   : > { %v2995_v25 = vmul.f32 %v995_v24, %v977_v4 }
 0x247   : > { %v1000_v26 = vpack.c.bf16 %v2995_v25, %v2995_v25 }
 0x249   : > { %1992 = vmatmul.msk.bf16.vlgmr.msra.gmra.mxu2 %vm836_vm3, %v1000_v26 }
 0x2cc   : > { %v1045_v27 = vpop.f32.mrf.mxu2 }
 0x2cd   : > { %v1190_v28 = vperm.slane %v1045_v27, 1  ;;  %v1177_v29 = vperm.slane %v1045_v27, 0  ;;  %v1049_v30 = vpack.c.bf16 %v1045_v27, %v1045_v27  ;;  %v1203_v33 = vperm.slane %v1045_v27, 2 }
 0x2ce   : > { %v1216_v35 = vperm.slane %v1045_v27, 3  ;;  %v1229_v36 = vperm.slane %v1045_v27, 4  ;;  %v1242_v37 = vperm.slane %v1045_v27, 5  ;;  %v1255_v38 = vperm.slane %v1045_v27, 6 }
 0x2cf   : > { %1201 = vperm.xlu0 %2172, %v1190_v28   ;;  %1188 = vperm.xlu2 %2170, %v1177_v29   ;;  %v1268_v41 = vperm.slane %v1045_v27, 7 }
 0x2d0   : > { %1055 = vrot.lane.b32.xlu1 %v1049_v30, %s2566_s14 }
 0x2d4   : > { %v1047_v32 = vpop.f32.mrf.mxu2 }
 0x2d7   : > { %2174 = vset.pattern.permute.xlu0 %v1315_v31  ;;  %2171 = vset.pattern.permute.xlu2 %v2987_v8 }
 0x2d8   : > { %1182 = vperm.xlu1 %2169, %v1177_v29  }
 0x2df   : > { %1317 = vperm.xlu0 %2174, %v1177_v29   ;;  %1195 = vperm.xlu2 %2171, %v1190_v28  }
 0x2e0   : > { %1208 = vperm.xlu1 %2169, %v1203_v33  }
 0x2e7   : > { %2177 = vset.pattern.permute.xlu0 %v1321_v34  ;;  %2173 = vset.pattern.permute.xlu2 %v2990_v9 }
 0x2e8   : > { %1221 = vperm.xlu1 %2169, %v1216_v35  }
 0x2ef   : > { %1347 = vperm.xlu0 %2177, %v1203_v33   ;;  %1214 = vperm.xlu2 %2173, %v1203_v33  }
 0x2f0   : > { %1234 = vperm.xlu1 %2169, %v1229_v36  }
 0x2f7   : > { %2182 = vset.pattern.permute.xlu0 %v1315_v31  ;;  %1227 = vperm.xlu2 %2173, %v1216_v35  }
 0x2f8   : > { %1247 = vperm.xlu1 %2169, %v1242_v37  }
 0x2ff   : > { %1365 = vperm.xlu0 %2182, %v1229_v36   ;;  %1240 = vperm.xlu2 %2173, %v1229_v36  }
 0x300   : > { %1260 = vperm.xlu1 %2169, %v1255_v38  }
 0x307   : > { %2185 = vset.pattern.permute.xlu0 %v1321_v34  ;;  %1253 = vperm.xlu2 %2173, %v1242_v37  }
 0x308   : > { %2175 = vset.pattern.permute.xlu1 %v1321_v34 }
 0x30f   : > { %1395 = vperm.xlu0 %2185, %v1255_v38   ;;  %1266 = vperm.xlu2 %2173, %v1255_v38  }
 0x310   : > { %1323 = vperm.xlu1 %2175, %v1177_v29  }
 0x317   : > { %2176 = vset.pattern.permute.xlu2 %v1315_v31 }
 0x318   : > { %1335 = vperm.xlu1 %2175, %v1190_v28  }
 0x31f   : > { %1329 = vperm.xlu2 %2176, %v1190_v28  }
 0x320   : > { %2178 = vset.pattern.permute.xlu1 %v2987_v8 }
 0x327   : > { %1341 = vperm.xlu2 %2176, %v1203_v33  }
 0x328   : > { %1273 = vperm.xlu1 %2178, %v1268_v41  }
 0x329   : > { %v3009_v43 = vpop.permute.xlu2 %1188 }
 0x32f   : > { %2179 = vset.pattern.permute.xlu2 %v2990_v9 }
 0x330   : > { %2180 = vset.pattern.permute.xlu1 %v1315_v31 }
 0x337   : > { %1279 = vperm.xlu2 %2179, %v1268_v41  }
 0x338   : > { %1353 = vperm.xlu1 %2180, %v1216_v35  }
 0x339   : > { %v3013_v45 = vpop.permute.xlu2 %1195 }
 0x33f   : > { %2181 = vset.pattern.permute.xlu2 %v1321_v34 }
 0x340   : > { %2183 = vset.pattern.permute.xlu1 %v1321_v34 }
 0x342   : > { %v1056_v42 = vpop.permute.xlu1 %1055 }
 0x343   : > { %1993 = vmatmul.msk.bf16.vlgmr.msra.gmra.mxu3 %vm1057_vm13, %v1056_v42 }
 0x347   : > { %1359 = vperm.xlu2 %2181, %v1216_v35  }
 0x348   : > { %1371 = vperm.xlu1 %2183, %v1229_v36  }
 0x349   : > { %v3017_v48 = vpop.permute.xlu2 %1214 }
 0x34a   : > { %v3011_v44 = vpop.permute.xlu1 %1182 }
 0x34f   : > { %2184 = vset.pattern.permute.xlu2 %v1315_v31 }
 0x350   : > { %1383 = vperm.xlu1 %2183, %v1242_v37  }
 0x351   : > { %v3021_v50 = vpop.permute.xlu2 %1227 }
 0x352   : > { %v3015_v47 = vpop.permute.xlu1 %1208 }
 0x357   : > { %1377 = vperm.xlu2 %2184, %v1242_v37  }
 0x358   : > { %2186 = vset.pattern.permute.xlu1 %v1315_v31 }
 0x359   : > { %v3027_v56 = vpop.permute.xlu2 %1240 }
 0x35a   : > { %v3019_v49 = vpop.permute.xlu1 %1221 }
 0x35f   : > { %1389 = vperm.xlu2 %2184, %v1255_v38  }
 0x360   : > { %1401 = vperm.xlu1 %2186, %v1268_v41  }
 0x361   : > { %v3031_v61 = vpop.permute.xlu2 %1253 }
 0x362   : > { %v3025_v54 = vpop.permute.xlu1 %1234 }
 0x367   : > { %2187 = vset.pattern.permute.xlu2 %v1321_v34 }
 0x369   : > { %v3035_v5 = vpop.permute.xlu2 %1266 }
 0x36a   : > { %v3029_v60 = vpop.permute.xlu1 %1247 }
 0x36f   : > { %1407 = vperm.xlu2 %2187, %v1268_v41  }
 0x372   : > { %v3033_v2 = vpop.permute.xlu1 %1260 }
 0x379   : > { %v3040_v17 = vpop.permute.xlu2 %1329 }
 0x381   : > { %v3050_v40 = vpop.permute.xlu2 %1341 }
 0x382   : > { %v3038_v13 = vpop.permute.xlu1 %1323 }
 0x38a   : > { %v3046_v33 = vpop.permute.xlu1 %1335 }
 0x3c6   : > { %v1074_v52 = vpop.f32.mrf.mxu3 }
 0x3c7   : > { %v1075_v53 = vadd.f32 %v2191_v51, %v1074_v52  ;;  %v3056_v51 = vld [vmem:[%s2886_s18] sm:$0xff] }
 0x3c9   : > { %v1081_v55 = vand.u32 2147483647, %v1075_v53  ;;  %v1078_v9 = vmax.f32 %v1075_v53, 0.0  ;;  %vm1079_vm15 = vcmp.ne.f32.partialorder %v1075_v53, %v1075_v53 }
 0x3cb   : > { %v1082_v57 = vsub.f32 0.0, %v1081_v55 }
 0x3cd   : > { %v1083_v58 = vmul.f32 1.442695, %v1082_v57 }
 0x3ce   : > { %v1076_v59 = vpop.f32.mrf.mxu3 }
 0x3cf   : > { %2201 = vpow2.f32 %v1083_v58  ;;  %v1410_v59 = vld [vmem:[#allocation5 + $0x8] sm:$0xff] }
 0x3d5   : > { %v2202_v62 = vpop.eup %2201 }
 0x3d6   : > { %v1085_v63 = vadd.f32 1.0, %v2202_v62  ;;  %v1088_v0 = vmul.f32 -0.5, %v2202_v62  ;;  %v1091_v3 = vand.u32 2147483647, %v2202_v62 }
 0x3d8   : > { %2203 = vlog2.f32 %v1085_v63  ;;  %v1089_v1 = vadd.f32 1.0, %v1088_v0  ;;  %vm1092_vm14 = vcmp.lt.f32.partialorder %v1091_v3, 0.0004427343 }
 0x3d9   : > { %2205 = vpow2.f32 %v1994_v11  ;;  %v3073_v11 = vpop.permute.xlu1 %1273 }
 0x3da   : > { %v1090_v8 = vmul.f32 %v2202_v62, %v1089_v1 }
 0x3de   : > { %v2204_v4 = vpop.eup %2203 }
 0x3df   : > { %v1087_v7 = vmul.f32 0.6931472, %v2204_v4  ;;  %v2206_v30 = vpop.eup %2205 }
 0x3e0   : > { %v3048_v38 = vadd.f32 1.0, %v2206_v30 }
 0x3e1   : > { %v1093_v10 = vsel %vm1092_vm14, %v1090_v8, %v1087_v7 }
 0x3e2   : > { %v1094_v12 = vadd.f32 %v1093_v10, %v1078_v9  ;;  %v1202_v10 = vpop.permute.xlu0 %1201  ;;  %vm1560_vm8 = vweird.f32 %v3048_v38 }
 0x3e4   : > { %v1095_v15 = vsel %vm1079_vm15, %v1075_v53, %v1094_v12 }
 0x3e5   : > { %v1097_v16 = vrot.slane %v1095_v15, 1  ;;  %v1098_v18 = vrot.slane %v1095_v15, 2  ;;  %v1104_v23 = vperm.slane %v1095_v15, 0  ;;  %v1099_v26 = vrot.slane %v1095_v15, 3 }
 0x3e6   : > { %v3044_v31 = vmul.f32 %v1095_v15, %v2995_v25  ;;  %v1100_v32 = vrot.slane %v1095_v15, 4  ;;  %v1101_v35 = vrot.slane %v1095_v15, 5  ;;  %v1102_v39 = vrot.slane %v1095_v15, 6 }
 0x3e7   : > { %v1105_v22 = vperm.slane %v1097_v16, 0  ;;  %v1121_v24 = vmul.f32 %v1104_v23, %v845_v19  ;;  %v1106_v27 = vperm.slane %v1098_v18, 0  ;;  %v1107_v34 = vperm.slane %v1099_v26, 0 }
 0x3e8   : > { %v3052_v41 = vperm.slane %v1100_v32, 0  ;;  %v1170_v42 = vrot.slane %v3044_v31, 1  ;;  %v1103_v52 = vrot.slane %v1095_v15, 7  ;;  %v1281_v53 = vperm.slane %v3044_v31, 0 }
 0x3e9   : > { %v1123_v28 = vmul.f32 %v1105_v22, %v845_v19  ;;  %v1138_v29 = vmul.f32 1.442695, %v1121_v24  ;;  %v1125_v36 = vmul.f32 %v1106_v27, %v845_v19  ;;  %v3059_v55 = vperm.slane %v1101_v35, 0 }
 0x3ea   : > { %v1127_v57 = vmul.f32 %v1107_v34, %v845_v19  ;;  %v3062_v63 = vperm.slane %v1102_v39, 0  ;;  %v1120_v0 = vmul.f32 %v1104_v23, %v3056_v51  ;;  %v1129_v1 = vmul.f32 %v3052_v41, %v845_v19 }
 0x3eb   : > { %2207 = vpow2.f32 %v1138_v29  ;;  %v1142_v37 = vmul.f32 1.442695, %v1123_v28  ;;  %v1146_v58 = vmul.f32 1.442695, %v1125_v36  ;;  %v1171_v3 = vrot.slane %v3044_v31, 2  ;;  %v3081_v28 = vpop.permute.xlu2 %1279 }
 0x3ec   : > { %v3067_v4 = vperm.slane %v1170_v42, 0  ;;  %v1298_v7 = vmul.f32 %v1281_v53, %v3009_v43  ;;  %v1122_v9 = vmul.f32 %v1105_v22, %v3056_v51  ;;  %v3075_v12 = vperm.slane %v1103_v52, 0 }
 0x3ed   : > { %2209 = vpow2.f32 %v1142_v37  ;;  %v1131_v15 = vmul.f32 %v3059_v55, %v845_v19  ;;  %v1150_v16 = vmul.f32 1.442695, %v1127_v57  ;;  %v855_v18 = vpack.c.bf16 %v2935_v6, %v2935_v6 }
 0x3ee   : > { %2211 = vrcp.f32 %v3048_v38  ;;  %v1133_v23 = vmul.f32 %v3062_v63, %v845_v19  ;;  %v1136_v26 = vmul.f32 1.442695, %v1120_v0  ;;  %v1154_v22 = vmul.f32 1.442695, %v1129_v1 }
 0x3ef   : > { %2213 = vpow2.f32 %v1146_v58  ;;  %v1172_v29 = vrot.slane %v3044_v31, 3  ;;  %v3084_v30 = vperm.slane %v1171_v3, 0  ;;  %v1300_v32 = vmul.f32 %v3067_v4, %v1202_v10  ;;  %v1409_v10 = vld [vmem:[#allocation5] sm:$0xff]  ;;  %857 = vst.msk [vmem:[#allocation3] sm:$0xf] %vm856_vm2, %v855_v18 }
 0x3f0   : > { %v1124_v37 = vmul.f32 %v1106_v27, %v3056_v51  ;;  %2215 = vpow2.f32 %v1136_v26  ;;  %v1140_v39 = vmul.f32 1.442695, %v1122_v9  ;;  %v1135_v42 = vmul.f32 %v3075_v12, %v845_v19 }
 0x3f1   : > { %v2208_v62 = vpop.eup %2207  ;;  %2217 = vpow2.f32 %v1150_v16  ;;  %v1158_v52 = vmul.f32 1.442695, %v1131_v15  ;;  %v1173_v57 = vrot.slane %v3044_v31, 4  ;;  %v1162_v58 = vmul.f32 1.442695, %v1133_v23  ;;  %v1318_v15 = vpop.permute.xlu0 %1317 }
 0x3f2   : > { %v1412_v8 = vmul.f32 %v2208_v62, %v1410_v59  ;;  %v1174_v59 = vrot.slane %v3044_v31, 5  ;;  %v1175_v62 = vrot.slane %v3044_v31, 6  ;;  %2219 = vpow2.f32 %v1154_v22  ;;  %v3103_v16 = vpop.permute.xlu1 %1353 }
 0x3f3   : > { %v2210_v43 = vpop.eup %2209  ;;  %v3098_v27 = vperm.slane %v1172_v29, 0  ;;  %v1302_v19 = vmul.f32 %v3084_v30, %v3017_v48  ;;  %2221 = vpow2.f32 %v1140_v39  ;;  %v1144_v9 = vmul.f32 1.442695, %v1124_v37 }
 0x3f4   : > { %v1414_v24 = vadd.f32 %v1412_v8, %v1298_v7  ;;  %v3087_v35 = vpop.eup %2211  ;;  %v1126_v8 = vmul.f32 %v1107_v34, %v3056_v51  ;;  %2223 = vpow2.f32 %v1158_v52  ;;  %v1166_v23 = vmul.f32 1.442695, %v1135_v42 }
 0x3f5   : > { %v2214_v1 = vpop.eup %2213  ;;  %v3096_v3 = vmul.f32 %v3087_v35, %v3048_v38  ;;  %v1176_v26 = vrot.slane %v3044_v31, 7  ;;  %2225 = vpow2.f32 %v1162_v58  ;;  %v3108_v29 = vperm.slane %v1174_v59, 0 }
 0x3f6   : > { %v1427_v36 = vmul.f32 %v2210_v43, %v1414_v24  ;;  %v3106_v43 = vperm.slane %v1173_v57, 0  ;;  %v2216_v22 = vpop.eup %2215  ;;  %v3110_v48 = vperm.slane %v1175_v62, 0  ;;  %v1304_v37 = vmul.f32 %v3098_v27, %v3021_v50 }
 0x3f7   : > { %v2218_v34 = vpop.eup %2217  ;;  %v1416_v39 = vmul.f32 %v1414_v24, %v3038_v13  ;;  %v1297_v42 = vmul.f32 %v1281_v53, %v3011_v44  ;;  %v1411_v52 = vmul.f32 %v2216_v22, %v1409_v10  ;;  %v1128_v58 = vmul.f32 %v3052_v41, %v3056_v51 }
 0x3f8   : > { %v1429_v0 = vadd.f32 %v1427_v36, %v1300_v32  ;;  %v3112_v36 = vpop.permute.xlu2 %1359  ;;  %2227 = vpow2.f32 %v1144_v9  ;;  %v1148_v59 = vmul.f32 1.442695, %v1126_v8  ;;  %v2220_v62 = vpop.eup %2219  ;;  %v1306_v50 = vmul.f32 %v3106_v43, %v3027_v56 }
 0x3f9   : > { %2229 = vpow2.f32 %v1166_v23  ;;  %v2222_v13 = vpop.eup %2221  ;;  %v1308_v31 = vmul.f32 %v3108_v29, %v3031_v61  ;;  %v1130_v53 = vmul.f32 %v3059_v55, %v3056_v51  ;;  %v1299_v41 = vmul.f32 %v3067_v4, %v3013_v45  ;;  %v1348_v22 = vpop.permute.xlu0 %1347 }
 0x3fa   : > { %v1442_v7 = vmul.f32 %v2214_v1, %v1429_v0  ;;  %v3122_v1 = vperm.slane %v1176_v26, 0  ;;  %v2224_v24 = vpop.eup %2223  ;;  %v1431_v8 = vmul.f32 %v1429_v0, %v3046_v33  ;;  %v1310_v23 = vmul.f32 %v3110_v48, %v3035_v5 }
 0x3fb   : > { %v2226_v56 = vpop.eup %2225  ;;  %2231 = vpow2.f32 %v1148_v59  ;;  %v1152_v61 = vmul.f32 1.442695, %v1128_v58  ;;  %v1132_v55 = vmul.f32 %v3062_v63, %v3056_v51  ;;  %v1134_v45 = vmul.f32 %v3075_v12, %v3056_v51 }
 0x3fc   : > { %v1444_v32 = vadd.f32 %v1442_v7, %v1302_v19  ;;  %v1413_v19 = vadd.f32 %v1411_v52, %v1297_v42  ;;  %v1418_v7 = vsel %vm836_vm3, %v1416_v39, 0.0  ;;  %v1301_v5 = vmul.f32 %v3084_v30, %v3015_v47 }
 0x3fd   : > { %v1312_v51 = vmul.f32 %v3122_v1, %v3081_v28  ;;  %2233 = vpow2.f32 %v1152_v61  ;;  %vm1561_vm7 = vweird.f32 %v3087_v35 }
 0x3fe   : > { %v1457_v57 = vmul.f32 %v2218_v34, %v1444_v32  ;;  %v1415_v9 = vmul.f32 %v1413_v19, %v1318_v15  ;;  %v1426_v10 = vmul.f32 %v2222_v13, %v1413_v19  ;;  %v1372_v34 = vpop.permute.xlu1 %1371  ;;  %v2228_v0 = vpop.eup %2227  ;;  %v1446_v58 = vmul.f32 %v1444_v32, %v1348_v22  ;;  %vm1562_vm10 = vmor %vm1560_vm8, %vm1561_vm7 }
 0x3ff   : > { %v2230_v42 = vpop.eup %2229  ;;  %v1164_v19 = vmul.f32 1.442695, %v1134_v45  ;;  %v1303_v32 = vmul.f32 %v3098_v27, %v3019_v49  ;;  %v1307_v49 = vmul.f32 %v3108_v29, %v3029_v60 }
 0x400   : > { %v1459_v44 = vadd.f32 %v1457_v57, %v1304_v37  ;;  %v1417_v4 = vsel %vm836_vm3, %v1415_v9, 0.0  ;;  %v1428_v33 = vadd.f32 %v1426_v10, %v1299_v41  ;;  %v1156_v37 = vmul.f32 1.442695, %v1130_v53  ;;  %v3143_v52 = vpop.permute.xlu2 %1377 }
 0x401   : > { %v1419_v39 = vadd.f32 %v1418_v7, %v1417_v4  ;;  %v1433_v57 = vsel %vm836_vm3, %v1431_v8, 0.0  ;;  %v2232_v13 = vpop.eup %2231  ;;  %v1448_v7 = vsel %vm836_vm3, %v1446_v58, 0.0  ;;  %v2033_v8 = vld [vmem:[%s2927_s15 + $0x18] sm:$0xff]  ;;  %v1366_v22 = vpop.permute.xlu0 %1365 }
 0x402   : > { %v1472_v26 = vmul.f32 %v2220_v62, %v1459_v44  ;;  %v1430_v63 = vmul.f32 %v1428_v33, %v3040_v17  ;;  %v1441_v59 = vmul.f32 %v2228_v0, %v1428_v33  ;;  %2235 = vpow2.f32 %v1156_v37  ;;  %1612 = vmatpush.bf16.msrb.mxu3 %v2033_v8 }
 0x403   : > { %v1420_v62 = vrot.slane %v1419_v39, 4  ;;  %v1461_v9 = vmul.f32 %v1459_v44, %v3112_v36  ;;  %v2032_v36 = vld [vmem:[%s2927_s15 + $0x10] sm:$0xff] }
 0x404   : > { %v1474_v15 = vadd.f32 %v1472_v26, %v1306_v50  ;;  %v1160_v50 = vmul.f32 1.442695, %v1132_v55  ;;  %v1432_v47 = vsel %vm836_vm3, %v1430_v63, 0.0  ;;  %v1443_v30 = vadd.f32 %v1441_v59, %v1301_v5  ;;  %v2031_v63 = vld [vmem:[%s2927_s15 + $0x8] sm:$0xff] }
 0x405   : > { %v1421_v41 = vadd.f32 %v1420_v62, %v1419_v39  ;;  %v1434_v17 = vadd.f32 %v1433_v57, %v1432_v47 }
 0x406   : > { %v1487_v12 = vmul.f32 %v2224_v24, %v1474_v15  ;;  %v1445_v28 = vmul.f32 %v1443_v30, %v3050_v40  ;;  %v1456_v24 = vmul.f32 %v2232_v13, %v1443_v30  ;;  %v2234_v40 = vpop.eup %2233  ;;  %v1476_v45 = vmul.f32 %v1474_v15, %v1372_v34  ;;  %v1384_v44 = vpop.permute.xlu1 %1383  ;;  %1613 = vmatpush.bf16.msrb.mxu3 %v2032_v36 }
 0x407   : > { %v1422_v26 = vrot.slane %v1421_v41, 2  ;;  %v1435_v61 = vrot.slane %v1434_v17, 4  ;;  %2237 = vpow2.f32 %v1160_v50 }
 0x408   : > { %v1489_v53 = vadd.f32 %v1487_v12, %v1308_v31  ;;  %v1305_v31 = vmul.f32 %v3106_v43, %v3025_v54  ;;  %v1447_v27 = vsel %vm836_vm3, %v1445_v28, 0.0  ;;  %v1458_v55 = vadd.f32 %v1456_v24, %v1303_v32  ;;  %v2236_v39 = vpop.eup %2235  ;;  %v1390_v57 = vpop.permute.xlu2 %1389 }
 0x409   : > { %v1423_v33 = vadd.f32 %v1422_v26, %v1421_v41  ;;  %v1436_v0 = vadd.f32 %v1435_v61, %v1434_v17  ;;  %v1463_v43 = vsel %vm836_vm3, %v1461_v9, 0.0  ;;  %v1478_v59 = vsel %vm836_vm3, %v1476_v45, 0.0  ;;  %v1396_v32 = vpop.permute.xlu0 %1395 }
 0x40a   : > { %v1502_v10 = vmul.f32 %v2226_v56, %v1489_v53  ;;  %v1449_v56 = vadd.f32 %v1448_v7, %v1447_v27  ;;  %v1460_v37 = vmul.f32 %v1458_v55, %v3103_v16  ;;  %v1471_v54 = vmul.f32 %v2234_v40, %v1458_v55  ;;  %1614 = vmatpush.bf16.msrb.mxu3 %v2031_v63  ;;  %v2030_v7 = vld [vmem:[%s2927_s15] sm:$0xff] }
 0x40b   : > { %v1491_v60 = vmul.f32 %v1489_v53, %v1384_v44  ;;  %v1437_v5 = vrot.slane %v1436_v0, 2  ;;  %v1424_v12 = vrot.slane %v1423_v33, 1  ;;  %2239 = vpow2.f32 %v1164_v19 }
 0x40c   : > { %v1504_v4 = vadd.f32 %v1502_v10, %v1310_v23  ;;  %v1309_v23 = vmul.f32 %v3110_v48, %v3033_v2  ;;  %v1450_v34 = vrot.slane %v1449_v56, 4  ;;  %v1462_v15 = vsel %vm836_vm3, %v1460_v37, 0.0 }
 0x40d   : > { %v1473_v58 = vadd.f32 %v1471_v54, %v1305_v31  ;;  %v1438_v62 = vadd.f32 %v1437_v5, %v1436_v0  ;;  %v1493_v13 = vsel %vm836_vm3, %v1491_v60, 0.0  ;;  %v1311_v2 = vmul.f32 %v3122_v1, %v3073_v11  ;;  %v2238_v53 = vpop.eup %2237 }
 0x40e   : > { %v1517_v29 = vmul.f32 %v2230_v42, %v1504_v4  ;;  %v1451_v50 = vadd.f32 %v1450_v34, %v1449_v56  ;;  %v1464_v42 = vadd.f32 %v1463_v43, %v1462_v15  ;;  %v1506_v24 = vmul.f32 %v1504_v4, %v1396_v32  ;;  %1615 = vmatpush.bf16.msrb.mxu3 %v2030_v7 }
 0x40f   : > { %v1475_v47 = vmul.f32 %v1473_v58, %v1366_v22  ;;  %v1486_v30 = vmul.f32 %v2236_v39, %v1473_v58  ;;  %v1439_v48 = vrot.slane %v1438_v62, 1  ;;  %v1425_v8 = vadd.f32 %v1424_v12, %v1423_v33 }
 0x410   : > { %v1519_v16 = vadd.f32 %v1517_v29, %v1312_v51  ;;  %v1465_v41 = vrot.slane %v1464_v42, 4  ;;  %v1452_v28 = vrot.slane %v1451_v50, 2  ;;  %v1408_v31 = vpop.permute.xlu2 %1407  ;;  %v1508_v45 = vsel %vm836_vm3, %v1506_v24, 0.0 }
 0x411   : > { %v1477_v51 = vsel %vm836_vm3, %v1475_v47, 0.0  ;;  %v1488_v17 = vadd.f32 %v1486_v30, %v1307_v49  ;;  %v1440_v10 = vadd.f32 %v1439_v48, %v1438_v62  ;;  %v1557_v58 = vsub.f32 1.0, %v3096_v3 }
 0x412   : > { %1532 = vst.msk [vmem:[#allocation5 + $0x8] sm:$0xff] %vm836_vm3, %v1519_v16  ;;  %v1479_v9 = vadd.f32 %v1478_v59, %v1477_v51  ;;  %v1466_v26 = vadd.f32 %v1465_v41, %v1464_v42  ;;  %v1453_v22 = vadd.f32 %v1452_v28, %v1451_v50  ;;  %v1521_v4 = vmul.f32 %v1519_v16, %v1408_v31 }
 0x413   : > { %v1490_v19 = vmul.f32 %v1488_v17, %v3143_v52  ;;  %v1501_v61 = vmul.f32 %v2238_v53, %v1488_v17  ;;  %v1533_v1 = vsel %vm1061_vm12, %v1425_v8, %v1440_v10  ;;  %v2240_v52 = vpop.eup %2239  ;;  %v1558_v48 = vmul.f32 %v3087_v35, %v1557_v58 }
 0x414   : > { %v1480_v11 = vrot.slane %v1479_v9, 4  ;;  %v1467_v27 = vrot.slane %v1466_v26, 2  ;;  %v1454_v40 = vrot.slane %v1453_v22, 1  ;;  %v1566_v24 = vand.u32 2147483648, %v3048_v38 }
 0x415   : > { %v1492_v49 = vsel %vm836_vm3, %v1490_v19, 0.0  ;;  %v1503_v55 = vadd.f32 %v1501_v61, %v1309_v23  ;;  %v1402_v23 = vpop.permute.xlu1 %1401  ;;  %v1559_v28 = vadd.f32 %v3087_v35, %v1558_v48  ;;  %vm1544_vm12 = vcmask 1046528  }
 0x416   : > { %v1481_v33 = vadd.f32 %v1480_v11, %v1479_v9  ;;  %v1494_v0 = vadd.f32 %v1493_v13, %v1492_v49  ;;  %v1455_v56 = vadd.f32 %v1454_v40, %v1453_v22  ;;  %v1468_v37 = vadd.f32 %v1467_v27, %v1466_v26  ;;  %v2192_v11 = vld [vmem:[%s821_s20] ss:$0 sm:$0xff] }
 0x417   : > { %v1505_v36 = vmul.f32 %v1503_v55, %v1390_v57  ;;  %v1516_v44 = vmul.f32 %v2240_v52, %v1503_v55  ;;  %v1523_v57 = vsel %vm836_vm3, %v1521_v4, 0.0  ;;  %v1564_v26 = vand.u32 2147483647, %v3048_v38 }
 0x418   : > { %v1482_v54 = vrot.slane %v1481_v33, 2  ;;  %v1495_v43 = vrot.slane %v1494_v0, 4  ;;  %v1469_v5 = vrot.slane %v1468_v37, 1  ;;  %v1535_v39 = vsel %vm1534_vm0, %v1533_v1, %v1455_v56 }
 0x419   : > { %v1507_v60 = vsel %vm836_vm3, %v1505_v36, 0.0  ;;  %v1518_v29 = vadd.f32 %v1516_v44, %v1311_v2  ;;  %v1563_v22 = vsel %vm1562_vm10, %v3087_v35, %v1559_v28  ;;  %v1567_v1 = vor.u32 1.1754944e-38, %v1566_v24 }
 0x41a   : > { %v1483_v18 = vadd.f32 %v1482_v54, %v1481_v33  ;;  %v1496_v34 = vadd.f32 %v1495_v43, %v1494_v0  ;;  %v1509_v15 = vadd.f32 %v1508_v45, %v1507_v60  ;;  %v1470_v59 = vadd.f32 %v1469_v5, %v1468_v37 }
 0x41b   : > { %v1520_v63 = vmul.f32 %v1518_v29, %v1402_v23  ;;  %1531 = vst.msk [vmem:[#allocation5] sm:$0xff] %vm836_vm3, %v1518_v29  ;;  %vm1565_vm11 = vcmp.eq.f32.partialorder %v1564_v26, 8.507059e+37  ;;  %v1549_v38 = vmul.f32 %v2192_v11, %v2995_v25 }
 0x41c   : > { %v1497_v16 = vrot.slane %v1496_v34, 2  ;;  %v1510_v12 = vrot.slane %v1509_v15, 4  ;;  %v1484_v62 = vrot.slane %v1483_v18, 1  ;;  %v1537_v42 = vsel %vm1536_vm4, %v1535_v39, %v1470_v59 }
 0x41d   : > { %v1522_v50 = vsel %vm836_vm3, %v1520_v63, 0.0  ;;  %v1568_v49 = vsel %vm1565_vm11, %v1567_v1, %v1563_v22 }
 0x41e   : > { %v1498_v47 = vadd.f32 %v1497_v16, %v1496_v34  ;;  %v1511_v30 = vadd.f32 %v1510_v12, %v1509_v15  ;;  %v1524_v13 = vadd.f32 %v1523_v57, %v1522_v50  ;;  %v1485_v2 = vadd.f32 %v1484_v62, %v1483_v18 }
 0x41f   : > { %v1570_v52 = vmul.f32 %v1568_v49, %v2976_v46 }
 0x420   : > { %v1499_v3 = vrot.slane %v1498_v47, 1  ;;  %v1512_v53 = vrot.slane %v1511_v30, 2  ;;  %v1525_v32 = vrot.slane %v1524_v13, 4  ;;  %v1539_v41 = vsel %vm1538_vm5, %v1537_v42, %v1485_v2 }
 0x422   : > { %v1513_v51 = vadd.f32 %v1512_v53, %v1511_v30  ;;  %v1526_v17 = vadd.f32 %v1525_v32, %v1524_v13  ;;  %v1500_v7 = vadd.f32 %v1499_v3, %v1498_v47 }
 0x424   : > { %v1514_v8 = vrot.slane %v1513_v51, 1  ;;  %v1527_v9 = vrot.slane %v1526_v17, 2  ;;  %v1541_v10 = vsel %vm1540_vm6, %v1539_v41, %v1500_v7 }
 0x426   : > { %v1515_v19 = vadd.f32 %v1514_v8, %v1513_v51  ;;  %v1528_v61 = vadd.f32 %v1527_v9, %v1526_v17 }
 0x428   : > { %v1529_v31 = vrot.slane %v1528_v61, 1  ;;  %v1543_v27 = vsel %vm1542_vm9, %v1541_v10, %v1515_v19 }
 0x42a   : > { %v1530_v55 = vadd.f32 %v1529_v31, %v1528_v61 }
 0x42c   : > { %v1545_v40 = vsel %vm1544_vm12, %v1543_v27, %v1530_v55 }
 0x42d   : > { %v1550_v45 = vadd.f32 %v1549_v38, %v1545_v40 }
 0x42f   : > { %v1571_v4 = vmul.f32 %v1570_v52, %v1550_v45 }
 0x431   : > { %v1572_v35 = vpack.c.bf16 %v1571_v4, %v1571_v4 }
 0x433   : > { %2011 = vmatmul.msk.bf16.vlgmr.msrb.gmra.mxu3 %vm836_vm3, %v1572_v35 }
 0x4b6   : > { %v1617_v33 = vpop.f32.mrf.mxu3 }
 0x4b7   : > { %v1621_v0 = vpack.c.bf16 %v1617_v33, %v1617_v33 }
 0x4b9   : > { %1622 = vst.msk [vmem:[#allocation2] sm:$0xf] %vm856_vm2, %v1621_v0 }
 0x4ba   : > { %1626 = sbr.rel (%p2012_p7) target bundleno = 1488 (0x5d0), region = 112 }
 0x4be   : > { %v1619_v36 = vpop.f32.mrf.mxu3 }
 0x4bf   : > { %v1627_v44 = vadd.f32 %v1617_v33, %v2935_v6  ;;  %v1651_v58 = vperm.slane %v2947_v20, 0  ;;  %v1655_v63 = vperm.slane %v2952_v21, 0 }
 0x4c1   : > { %v1628_v25 = vsel %vm858_vm1, %v1627_v44, 0.0 }
 0x4c2   : > { %1629 = vadd.xlane.f32.xlu0 %v1628_v25 }
 0x535   : > { %v1630_v56 = vpop.xlane.xlu0 %1629 }
 0x536   : > { %v1631_v46 = vmul.f32 %v1630_v56, %v2939_v14 }
 0x538   : > { %v1632_v37 = vsub.f32 %v1627_v44, %v1631_v46 }
 0x53a   : > { %v1633_v54 = vmul.f32 %v1632_v37, %v1632_v37 }
 0x53c   : > { %v1634_v43 = vsel %vm858_vm1, %v1633_v54, 0.0 }
 0x53d   : > { %1635 = vadd.xlane.f32.xlu0 %v1634_v43 }
 0x5b0   : > { %v1636_v60 = vpop.xlane.xlu0 %1635 }
 0x5b1   : > { %v1637_v29 = vmul.f32 %v1636_v60, %v2939_v14 }
 0x5b3   : > { %v1638_v5 = vadd.f32 1e-05, %v1637_v29 }
 0x5b5   : > { %2241 = vrsqrt.f32 %v1638_v5  ;;  %vm1645_vm13 = vweird.f32 %v1638_v5 }
 0x5bb   : > { %v2242_v39 = vpop.eup %2241 }
 0x5bc   : > { %v1640_v23 = vmul.f32 %v2242_v39, %v1638_v5  ;;  %vm1646_vm3 = vweird.f32 %v2242_v39 }
 0x5bd   : > { %vm1647_vm14 = vmor %vm1645_vm13, %vm1646_vm3 }
 0x5be   : > { %v1641_v6 = vmul.f32 %v2242_v39, %v1640_v23 }
 0x5c0   : > { %v1642_v18 = vmul.f32 0.5, %v1641_v6 }
 0x5c2   : > { %v1643_v34 = vsub.f32 1.5, %v1642_v18 }
 0x5c4   : > { %v1644_v15 = vmul.f32 %v2242_v39, %v1643_v34 }
 0x5c6   : > { %v1648_v57 = vsel %vm1647_vm14, %v2242_v39, %v1644_v15 }
 0x5c7   : > { %v1649_v59 = vmul.f32 %v1648_v57, %v1632_v37 }
 0x5c9   : > { %v1653_v16 = vmul.f32 %v1651_v58, %v1649_v59 }
 0x5cb   : > { %v1657_v14 = vadd.f32 %v1655_v63, %v1653_v16 }
 0x5cd   : > { %v1658_v12 = vpack.c.bf16 %v1657_v14, %v1657_v14 }
 0x5cf   : > { %1659 = vst.msk [vmem:[%s2931_s29] sm:$0xf] %vm856_vm2, %v1658_v12 }
 0x5d0 PF: > { %s3369_s20 = sld [smem:[#allocation29_spill]]  ;;  %s1673_s22 = sshll.u32 %s2931_s29, 4  ;;  %s1674_s22 = int_to_ptr.vmem [resolvable:$true] %s1673_s22 }
 0x5d1   : > { %s3370_s9 = sld [smem:[#allocation53_spill]]  ;;  %s1661_s8 = scalar_lea.sflag [#allocation8], %s2853_s13 }
 0x5d6   : > { %s2014_s15 = sshll.u32 %s3369_s20, 2 }
 0x5d7   : > { %s1671_s21 = scalar_lea.hbm %s3370_s9, %s2014_s15  ;;  %s2443_s4 = scalar_lea.hbm %s3370_s9, 8 }
 0x5d8   : > { %s1675_s26 = sshll.u32 %s1671_s21, 4  ;;  %s1676_s26 = int_to_ptr.hbm [resolvable:$true] %s1675_s26 }
 0x5d9   : > { %s2437_s10 = sshra.s32 %s1676_s26, 4  ;;  %s2438_s10 = int_to_ptr.hbm [resolvable:$true] %s2437_s10 }
 0x5da   : > { %s2439_s30 = scalar_lea.hbm %s2438_s10, 4  ;;  %p2444_p0 = scmp.lt.s32.totalorder %s2438_s10, %s3370_s9 }
 0x5db   : > { %p2440_p10 = scmp.ne.s32.totalorder %s2438_s10, %s2439_s30  ;;  %p2445_p5 = scmp.lt.s32.totalorder %s2443_s4, %s2439_s30 }
 0x5dd   : > { %p2441_p11 = pnand %p2440_p10, %p2804_p12  ;;  %p2446_p6 = por %p2445_p5, %p2444_p0 }
 0x5df   : > { %p2442_p3 = pneg %p2441_p11 }
 0x5e1   : > { %p2447_p8 = pnand %p2446_p6, %p2442_p3 }
 0x5e3   : > { %2450 = shalt.err (!%p2447_p8)
}
 0x5e4   : > { %2046 = dma.vmem_to_hbm [thread:$0]  (%p2804_p12), %s1674_s22, 64, %s1676_s26, %s1661_s8  }
 0x5e5 PF: > { %s3371_s13 = sld [smem:[#allocation25_spill]]  ;;  %p2072_p13 = scmp.ge.s32.totalorder %s2557_s28, 2 }
 0x5e7   : > { %p2068_p9 = pnand %p2072_p13, %p2813_p1 }
 0x5e9   : > { %p2069_p2 = pneg %p2068_p9 }
 0x5eb   : > { %s1687_s25 = sand.u32 1, %s3371_s13  }
 0x5ec   : > { %s1688_s27 = scalar_lea.sflag [#allocation8], %s1687_s25 }
 0x5ed   : > { %2512 = dma.done.wait (%p2069_p2), %s1688_s27, 64  }
 0x5ee   : > { %2514 = vsyncadd (%p2069_p2), %s1688_s27, 4294967232  ;;  %s40_s28 = sadd.s32 1, %s2557_s28   ;;  %s3373_s18 = sld [smem:[#allocation23_spill]] }
 0x5ef   : > { %p37_p4 = scmp.ge.s32.totalorder %s40_s28, 6   ;;  %s3374_s19 = sld [smem:[#allocation24_spill]] }
 0x5f0   : > { %s3375_s20 = sld [smem:[#allocation35_spill]] }
 0x5f1   : > { %s3376_s21 = sld [smem:[#allocation26_spill]] }
 0x5f2   : > { %s3377_s22 = sld [smem:[#allocation27_spill]] }
 0x5f3   : > { %s3378_s23 = sld [smem:[#allocation36_spill]]  ;;  %39 = sbr.rel (!%p37_p4) target bundleno = 32 (0x20), region = 215 }
 0x5f4   : > { %s3379_s24 = sld [smem:[#allocation30_spill]] }
 0x5f5   : > { %s3380_s25 = sld [smem:[#allocation31_spill]] }
 0x5f6   : > { %s3381_s26 = sld [smem:[#allocation32_spill]] }
 0x5f7   : > { %s3382_s27 = sld [smem:[#allocation33_spill]] }
 0x5f8   :  { %1694 = vsyncpa [#allocation7], 1 }
 0x5f9   :  { %1696 = vsyncpa [#allocation7 + $0x1], 1 }
 0x5fa   :  { %1697 = vsyncpa [#allocation10], 1 }
 0x5fb   :  { %1699 = vsyncpa [#allocation10 + $0x1], 1 }
 0x5fc   :  { %1700 = vsyncpa [#allocation13], 1 }
 0x5fd   :  { %1702 = vsyncpa [#allocation13 + $0x1], 1 }
 0x5fe   :  { %1703 = vsyncpa [#allocation16], 1 }
 0x5ff   :  { %1705 = vsyncpa [#allocation16 + $0x1], 1 }
 0x600   :  { %1706 = vsyncpa [#allocation8], 1 }
 0x601   :  { %1708 = vsyncpa [#allocation8 + $0x1], 1 }

</bundles_post_ra>
